<compile_context>
chip_gen: v5e
topology: v5e:2x2
jax: 0.10.0
libtpu: 0.0.40
codegen_flags: <defaults>
</compile_context>

<pallas_src>
import functools

import jax
import jax.numpy as jnp
from jax import lax
from jax.experimental import pallas as pl
from jax.experimental.pallas import tpu as pltpu

KSIZE = 7
PAD = KSIZE // 2


def _spatial_attention_kernel(x_ref, mask_ref, w_ref, o_ref,
                              sum_acc, max_acc, pad_a, pad_m, *, C, W):
    # x_ref   : (BT, C_TILE, HW) input block, native dtype (lane-dense)
    # mask_ref: (K, HW) f32 per-kw column-validity masks
    # w_ref   : (2*K*K,) f32 conv taps in SMEM ([0:49]=avg chan, [49:98]=max chan)
    # o_ref   : (BT, HW) output block (written only on the last channel step)
    # sum_acc/max_acc : (BT, HW) f32 scratch accumulators (live across C steps)
    # pad_a/pad_m     : (BT, HW + 2*(PAD*W+PAD)) f32 zero-padded flat [avg|max] maps
    bt, c_tile, hw = x_ref.shape
    padf = PAD * W + PAD
    c_step = pl.program_id(1)

    # ---- per-block channel reduction: 4 interleaved (sum, max) accumulators ----
    n_acc = min(4, c_tile)
    part_s = [x_ref[:, r, :].astype(jnp.float32) for r in range(n_acc)]
    part_m = list(part_s)
    for i in range(n_acc, c_tile):
        r = i % n_acc
        xi = x_ref[:, i, :].astype(jnp.float32)
        part_s[r] = part_s[r] + xi
        part_m[r] = jnp.maximum(part_m[r], xi)
    while len(part_s) > 1:  # shallow pairwise combine
        part_s = ([part_s[i] + part_s[i + 1] for i in range(0, len(part_s) - 1, 2)]
                  + ([part_s[-1]] if len(part_s) % 2 else []))
        part_m = ([jnp.maximum(part_m[i], part_m[i + 1])
                   for i in range(0, len(part_m) - 1, 2)]
                  + ([part_m[-1]] if len(part_m) % 2 else []))
    blk_sum, blk_max = part_s[0], part_m[0]

    @pl.when(c_step == 0)
    def _():
        sum_acc[...] = jnp.zeros_like(sum_acc)
        max_acc[...] = jnp.full(max_acc.shape, -jnp.inf, dtype=max_acc.dtype)

    sum_acc[...] += blk_sum
    max_acc[...] = jnp.maximum(max_acc[...], blk_max)

    # ---- epilogue on the last channel step: pad -> 7x7 conv -> sigmoid ----
    @pl.when(c_step == pl.num_programs(1) - 1)
    def _():
        # Hoist all 98 SMEM tap reads (and their splats) out of the FMA loops.
        taps = [w_ref[i] for i in range(2 * KSIZE * KSIZE)]

        # Zero-padded flat maps: the zero pad handles every out-of-range row
        # read; the per-kw masks zero every output lane whose window column
        # would cross a row boundary (exactly matching torch's zero-padded conv
        # on the 2-channel [avg, max] map).
        pad_a[...] = jnp.zeros_like(pad_a)
        pad_m[...] = jnp.zeros_like(pad_m)
        pad_a[:, padf:padf + hw] = sum_acc[...] * jnp.float32(1.0 / C)
        pad_m[:, padf:padf + hw] = max_acc[...]

        accs = [jnp.zeros((bt, hw), jnp.float32) for _ in range(4)]
        for kw in range(KSIZE):
            maskw = mask_ref[kw:kw + 1, :]               # (1, HW), broadcasts over BT
            pa = jnp.zeros((bt, hw), jnp.float32)
            pm = jnp.zeros((bt, hw), jnp.float32)
            for kh in range(KSIZE):
                off = kh * W + kw                        # static lane offset
                pa = pa + pad_a[:, off:off + hw] * taps[kh * KSIZE + kw]
                pm = pm + pad_m[:, off:off + hw] * taps[KSIZE * KSIZE + kh * KSIZE + kw]
            accs[kw % 4] = accs[kw % 4] + maskw * (pa + pm)
        acc = (accs[0] + accs[1]) + (accs[2] + accs[3])
        o_ref[...] = jax.nn.sigmoid(acc).astype(o_ref.dtype)


def _pick_tile(dim, bytes_per_unit, target_bytes):
    """Largest divisor of `dim` (either the full dim, or a multiple of 8 so
    sub-full blocks satisfy the TPU (8,128) second-minor rule) whose block
    stays under the byte target."""
    if dim * bytes_per_unit <= target_bytes:
        return dim
    best = None
    for d in range(1, dim):
        if dim % d == 0 and d % 8 == 0 and d * bytes_per_unit <= target_bytes:
            best = d
    return best if best is not None else dim


def spatial_attention(x, conv_w):
    """x: (B, C, H, W); conv_w: (1, 2, 7, 7). Returns (B, 1, H, W) attention map."""
    B, C, H, W = x.shape
    HW = H * W
    itemsize = jnp.dtype(x.dtype).itemsize

    # Lane-dense layout: contiguous reshape only (no transpose, no pre-padding,
    # no dtype pre-cast — bf16 inputs stay bf16 through the HBM reads).
    x_flat = x.reshape(B, C, HW)
    w_flat = conv_w.reshape(-1).astype(jnp.float32)           # (2*7*7,) SMEM taps

    # Per-kw column-validity masks for the flat-index conv (tiny constant input).
    col = jnp.arange(HW, dtype=jnp.int32) % W
    masks = jnp.stack(
        [((col >= PAD - kw) & (col < W + PAD - kw)).astype(jnp.float32)
         for kw in range(KSIZE)], axis=0)                     # (K, HW)

    # Blocking: target ~1 MiB input blocks; C is the innermost ('arbitrary')
    # reduction axis with scratch accumulators so VMEM stays bounded for big C.
    target = 1 << 20
    c_tile = _pick_tile(C, HW * itemsize, target)
    b_tile = _pick_tile(B, c_tile * HW * itemsize, target)
    grid = (B // b_tile, C // c_tile)
    # TODO(synk): when B == 1 on v7x (2 TensorCores), add a parallel spatial
    # split (two H halves with a 3-row halo) so both cores get work.

    lpad = HW + 2 * (PAD * W + PAD)
    vmem_need = (2 * b_tile * c_tile * HW * itemsize          # double-buffered input
                 + 2 * b_tile * HW * itemsize                 # output block
                 + 2 * KSIZE * HW * 4                         # masks
                 + (2 * b_tile * HW + 2 * b_tile * lpad) * 4  # scratch
                 + (4 << 20))                                 # headroom
    vmem_limit = int(min(max(vmem_need, 16 << 20), 48 << 20))  # 48 MiB v7x-safe cap

    kernel = functools.partial(_spatial_attention_kernel, C=C, W=W)
    out_flat = pl.pallas_call(
        kernel,
        out_shape=jax.ShapeDtypeStruct((B, HW), x.dtype),
        grid=grid,
        in_specs=[
            pl.BlockSpec((b_tile, c_tile, HW), lambda b, c: (b, c, 0)),
            pl.BlockSpec((KSIZE, HW), lambda b, c: (0, 0)),
            pl.BlockSpec(memory_space=pltpu.MemorySpace.SMEM),
        ],
        out_specs=pl.BlockSpec((b_tile, HW), lambda b, c: (b, 0)),
        scratch_shapes=[
            pltpu.VMEM((b_tile, HW), jnp.float32),    # sum accumulator
            pltpu.VMEM((b_tile, HW), jnp.float32),    # max accumulator
            pltpu.VMEM((b_tile, lpad), jnp.float32),  # padded avg map
            pltpu.VMEM((b_tile, lpad), jnp.float32),  # padded max map
        ],
        compiler_params=pltpu.CompilerParams(
            dimension_semantics=("parallel", "arbitrary"),
            vmem_limit_bytes=vmem_limit),
    )(x_flat, masks, w_flat)

    return out_flat.reshape(B, 1, H, W)


def _reference(x, conv_w):
    avg = jnp.mean(x, axis=1, keepdims=True)
    mx = jnp.max(x, axis=1, keepdims=True)
    cat = jnp.concatenate([avg, mx], axis=1)
    y = lax.conv_general_dilated(
        cat, conv_w, window_strides=(1, 1),
        padding=[(PAD, PAD), (PAD, PAD)],
        dimension_numbers=("NCHW", "OIHW", "NCHW"))
    return jax.nn.sigmoid(y)


if __name__ == "__main__":
    key = jax.random.PRNGKey(0)
    kx, kw = jax.random.split(key)

    B, C, H, W = 2, 4, 16, 16
    x = jax.random.normal(kx, (B, C, H, W), dtype=jnp.float32)
    # Deterministic conv weight (shape from nn.Conv2d(2, 1, 7, bias=False)).
    conv_w = (jax.random.normal(kw, (1, 2, KSIZE, KSIZE), dtype=jnp.float32)
              * (1.0 / (2 * KSIZE * KSIZE) ** 0.5))

    out = spatial_attention(x, conv_w)
    out = jax.block_until_ready(out)

    ref = _reference(x, conv_w)
    assert out.shape == (B, 1, H, W)
    assert jnp.allclose(out, ref, atol=1e-5, rtol=1e-5), "mismatch vs reference"

    print("KERNEL_OK")
</pallas_src>

<mosaic_0001>
module attributes {stable_mosaic.version = 11 : i64} {
  func.func @_spatial_attention_kernel(%arg0: i32, %arg1: i32, %arg2: memref<2x4x256xf32, #tpu.memory_space<vmem>>, %arg3: memref<7x256xf32, #tpu.memory_space<vmem>>, %arg4: memref<98xf32, #tpu.memory_space<smem>>, %arg5: memref<2x256xf32, #tpu.memory_space<vmem>>, %arg6: memref<2x256xf32, #tpu.memory_space<vmem>>, %arg7: memref<2x256xf32, #tpu.memory_space<vmem>>, %arg8: memref<2x358xf32, #tpu.memory_space<vmem>>, %arg9: memref<2x358xf32, #tpu.memory_space<vmem>>) attributes {dimension_semantics = [#tpu.dimension_semantics<parallel>, #tpu.dimension_semantics<arbitrary>], iteration_bounds = array<i64: 1, 1>, scalar_prefetch = 0 : i64, scratch_operands = 4 : i64, tpu.core_type = #tpu.core_type<tc>, window_params = [{transform_indices = @transform_0, window_bounds = array<i64: 2, 4, 256>}, {pipeline_mode = #tpu.pipeline_mode<synchronous>, transform_indices = @transform_1, window_bounds = array<i64: 7, 256>}, {transform_indices = @transform_2, window_bounds = array<i64: 98>}, {transform_indices = @transform_3, window_bounds = array<i64: 2, 256>}]} {
    %c0 = arith.constant 0 : index
    %c0_0 = arith.constant 0 : index
    %c0_1 = arith.constant 0 : index
    %0 = vector.load %arg2[%c0, %c0_0, %c0_1] : memref<2x4x256xf32, #tpu.memory_space<vmem>>, vector<2x1x256xf32>
    %1 = vector.shape_cast %0 : vector<2x1x256xf32> to vector<2x256xf32>
    %c0_2 = arith.constant 0 : index
    %c1 = arith.constant 1 : index
    %c0_3 = arith.constant 0 : index
    %2 = vector.load %arg2[%c0_2, %c1, %c0_3] : memref<2x4x256xf32, #tpu.memory_space<vmem>>, vector<2x1x256xf32>
    %3 = vector.shape_cast %2 : vector<2x1x256xf32> to vector<2x256xf32>
    %c0_4 = arith.constant 0 : index
    %c2 = arith.constant 2 : index
    %c0_5 = arith.constant 0 : index
    %4 = vector.load %arg2[%c0_4, %c2, %c0_5] : memref<2x4x256xf32, #tpu.memory_space<vmem>>, vector<2x1x256xf32>
    %5 = vector.shape_cast %4 : vector<2x1x256xf32> to vector<2x256xf32>
    %c0_6 = arith.constant 0 : index
    %c3 = arith.constant 3 : index
    %c0_7 = arith.constant 0 : index
    %6 = vector.load %arg2[%c0_6, %c3, %c0_7] : memref<2x4x256xf32, #tpu.memory_space<vmem>>, vector<2x1x256xf32>
    %7 = vector.shape_cast %6 : vector<2x1x256xf32> to vector<2x256xf32>
    %8 = arith.addf %1, %3 : vector<2x256xf32>
    %9 = arith.addf %5, %7 : vector<2x256xf32>
    %10 = arith.maximumf %1, %3 : vector<2x256xf32>
    %11 = arith.maximumf %5, %7 : vector<2x256xf32>
    %12 = arith.addf %8, %9 : vector<2x256xf32>
    %13 = arith.maximumf %10, %11 : vector<2x256xf32>
    %c0_i32 = arith.constant 0 : i32
    %14 = arith.cmpi eq, %arg1, %c0_i32 : i32
    %15 = arith.extui %14 : i1 to i32
    %c0_i32_8 = arith.constant 0 : i32
    %16 = arith.cmpi ne, %15, %c0_i32_8 : i32
    scf.if %16 {
      %cst = arith.constant 0.000000e+00 : f32
      %26 = vector.broadcast %cst : f32 to vector<2x256xf32>
      %c0_19 = arith.constant 0 : index
      %c0_20 = arith.constant 0 : index
      %27 = vector.load %arg6[%c0_19, %c0_20] : memref<2x256xf32, #tpu.memory_space<vmem>>, vector<2x256xf32>
      tpu.vector_store %arg6[%c0_19, %c0_20], %26 {strides = array<i32>} : memref<2x256xf32, #tpu.memory_space<vmem>>, vector<2x256xf32>,
      %cst_21 = arith.constant 0xFF800000 : f32
      %28 = vector.broadcast %cst_21 : f32 to vector<2x256xf32>
      %c0_22 = arith.constant 0 : index
      %c0_23 = arith.constant 0 : index
      %29 = vector.load %arg7[%c0_22, %c0_23] : memref<2x256xf32, #tpu.memory_space<vmem>>, vector<2x256xf32>
      tpu.vector_store %arg7[%c0_22, %c0_23], %28 {strides = array<i32>} : memref<2x256xf32, #tpu.memory_space<vmem>>, vector<2x256xf32>,
    } else {
    }
    %c0_9 = arith.constant 0 : index
    %c0_10 = arith.constant 0 : index
    %17 = vector.load %arg6[%c0_9, %c0_10] : memref<2x256xf32, #tpu.memory_space<vmem>>, vector<2x256xf32>
    %18 = arith.addf %17, %12 : vector<2x256xf32>
    %c0_11 = arith.constant 0 : index
    %c0_12 = arith.constant 0 : index
    %19 = vector.load %arg6[%c0_11, %c0_12] : memref<2x256xf32, #tpu.memory_space<vmem>>, vector<2x256xf32>
    tpu.vector_store %arg6[%c0_11, %c0_12], %18 {strides = array<i32>} : memref<2x256xf32, #tpu.memory_space<vmem>>, vector<2x256xf32>,
    %c0_13 = arith.constant 0 : index
    %c0_14 = arith.constant 0 : index
    %20 = vector.load %arg7[%c0_13, %c0_14] : memref<2x256xf32, #tpu.memory_space<vmem>>, vector<2x256xf32>
    %21 = arith.maximumf %20, %13 : vector<2x256xf32>
    %c0_15 = arith.constant 0 : index
    %c0_16 = arith.constant 0 : index
    %22 = vector.load %arg7[%c0_15, %c0_16] : memref<2x256xf32, #tpu.memory_space<vmem>>, vector<2x256xf32>
    tpu.vector_store %arg7[%c0_15, %c0_16], %21 {strides = array<i32>} : memref<2x256xf32, #tpu.memory_space<vmem>>, vector<2x256xf32>,
    %c0_i32_17 = arith.constant 0 : i32
    %23 = arith.cmpi eq, %arg1, %c0_i32_17 : i32
    %24 = arith.extui %23 : i1 to i32
    %c0_i32_18 = arith.constant 0 : i32
    %25 = arith.cmpi ne, %24, %c0_i32_18 : i32
    scf.if %25 {
      %c0_19 = arith.constant 0 : index
      %26 = memref.load %arg4[%c0_19] : memref<98xf32, #tpu.memory_space<smem>>
      %c1_20 = arith.constant 1 : index
      %27 = memref.load %arg4[%c1_20] : memref<98xf32, #tpu.memory_space<smem>>
      %c2_21 = arith.constant 2 : index
      %28 = memref.load %arg4[%c2_21] : memref<98xf32, #tpu.memory_space<smem>>
      %c3_22 = arith.constant 3 : index
      %29 = memref.load %arg4[%c3_22] : memref<98xf32, #tpu.memory_space<smem>>
      %c4 = arith.constant 4 : index
      %30 = memref.load %arg4[%c4] : memref<98xf32, #tpu.memory_space<smem>>
      %c5 = arith.constant 5 : index
      %31 = memref.load %arg4[%c5] : memref<98xf32, #tpu.memory_space<smem>>
      %c6 = arith.constant 6 : index
      %32 = memref.load %arg4[%c6] : memref<98xf32, #tpu.memory_space<smem>>
      %c7 = arith.constant 7 : index
      %33 = memref.load %arg4[%c7] : memref<98xf32, #tpu.memory_space<smem>>
      %c8 = arith.constant 8 : index
      %34 = memref.load %arg4[%c8] : memref<98xf32, #tpu.memory_space<smem>>
      %c9 = arith.constant 9 : index
      %35 = memref.load %arg4[%c9] : memref<98xf32, #tpu.memory_space<smem>>
      %c10 = arith.constant 10 : index
      %36 = memref.load %arg4[%c10] : memref<98xf32, #tpu.memory_space<smem>>
      %c11 = arith.constant 11 : index
      %37 = memref.load %arg4[%c11] : memref<98xf32, #tpu.memory_space<smem>>
      %c12 = arith.constant 12 : index
      %38 = memref.load %arg4[%c12] : memref<98xf32, #tpu.memory_space<smem>>
      %c13 = arith.constant 13 : index
      %39 = memref.load %arg4[%c13] : memref<98xf32, #tpu.memory_space<smem>>
      %c14 = arith.constant 14 : index
      %40 = memref.load %arg4[%c14] : memref<98xf32, #tpu.memory_space<smem>>
      %c15 = arith.constant 15 : index
      %41 = memref.load %arg4[%c15] : memref<98xf32, #tpu.memory_space<smem>>
      %c16 = arith.constant 16 : index
      %42 = memref.load %arg4[%c16] : memref<98xf32, #tpu.memory_space<smem>>
      %c17 = arith.constant 17 : index
      %43 = memref.load %arg4[%c17] : memref<98xf32, #tpu.memory_space<smem>>
      %c18 = arith.constant 18 : index
      %44 = memref.load %arg4[%c18] : memref<98xf32, #tpu.memory_space<smem>>
      %c19 = arith.constant 19 : index
      %45 = memref.load %arg4[%c19] : memref<98xf32, #tpu.memory_space<smem>>
      %c20 = arith.constant 20 : index
      %46 = memref.load %arg4[%c20] : memref<98xf32, #tpu.memory_space<smem>>
      %c21 = arith.constant 21 : index
      %47 = memref.load %arg4[%c21] : memref<98xf32, #tpu.memory_space<smem>>
      %c22 = arith.constant 22 : index
      %48 = memref.load %arg4[%c22] : memref<98xf32, #tpu.memory_space<smem>>
      %c23 = arith.constant 23 : index
      %49 = memref.load %arg4[%c23] : memref<98xf32, #tpu.memory_space<smem>>
      %c24 = arith.constant 24 : index
      %50 = memref.load %arg4[%c24] : memref<98xf32, #tpu.memory_space<smem>>
      %c25 = arith.constant 25 : index
      %51 = memref.load %arg4[%c25] : memref<98xf32, #tpu.memory_space<smem>>
      %c26 = arith.constant 26 : index
      %52 = memref.load %arg4[%c26] : memref<98xf32, #tpu.memory_space<smem>>
      %c27 = arith.constant 27 : index
      %53 = memref.load %arg4[%c27] : memref<98xf32, #tpu.memory_space<smem>>
      %c28 = arith.constant 28 : index
      %54 = memref.load %arg4[%c28] : memref<98xf32, #tpu.memory_space<smem>>
      %c29 = arith.constant 29 : index
      %55 = memref.load %arg4[%c29] : memref<98xf32, #tpu.memory_space<smem>>
      %c30 = arith.constant 30 : index
      %56 = memref.load %arg4[%c30] : memref<98xf32, #tpu.memory_space<smem>>
      %c31 = arith.constant 31 : index
      %57 = memref.load %arg4[%c31] : memref<98xf32, #tpu.memory_space<smem>>
      %c32 = arith.constant 32 : index
      %58 = memref.load %arg4[%c32] : memref<98xf32, #tpu.memory_space<smem>>
      %c33 = arith.constant 33 : index
      %59 = memref.load %arg4[%c33] : memref<98xf32, #tpu.memory_space<smem>>
      %c34 = arith.constant 34 : index
      %60 = memref.load %arg4[%c34] : memref<98xf32, #tpu.memory_space<smem>>
      %c35 = arith.constant 35 : index
      %61 = memref.load %arg4[%c35] : memref<98xf32, #tpu.memory_space<smem>>
      %c36 = arith.constant 36 : index
      %62 = memref.load %arg4[%c36] : memref<98xf32, #tpu.memory_space<smem>>
      %c37 = arith.constant 37 : index
      %63 = memref.load %arg4[%c37] : memref<98xf32, #tpu.memory_space<smem>>
      %c38 = arith.constant 38 : index
      %64 = memref.load %arg4[%c38] : memref<98xf32, #tpu.memory_space<smem>>
      %c39 = arith.constant 39 : index
      %65 = memref.load %arg4[%c39] : memref<98xf32, #tpu.memory_space<smem>>
      %c40 = arith.constant 40 : index
      %66 = memref.load %arg4[%c40] : memref<98xf32, #tpu.memory_space<smem>>
      %c41 = arith.constant 41 : index
      %67 = memref.load %arg4[%c41] : memref<98xf32, #tpu.memory_space<smem>>
      %c42 = arith.constant 42 : index
      %68 = memref.load %arg4[%c42] : memref<98xf32, #tpu.memory_space<smem>>
      %c43 = arith.constant 43 : index
      %69 = memref.load %arg4[%c43] : memref<98xf32, #tpu.memory_space<smem>>
      %c44 = arith.constant 44 : index
      %70 = memref.load %arg4[%c44] : memref<98xf32, #tpu.memory_space<smem>>
      %c45 = arith.constant 45 : index
      %71 = memref.load %arg4[%c45] : memref<98xf32, #tpu.memory_space<smem>>
      %c46 = arith.constant 46 : index
      %72 = memref.load %arg4[%c46] : memref<98xf32, #tpu.memory_space<smem>>
      %c47 = arith.constant 47 : index
      %73 = memref.load %arg4[%c47] : memref<98xf32, #tpu.memory_space<smem>>
      %c48 = arith.constant 48 : index
      %74 = memref.load %arg4[%c48] : memref<98xf32, #tpu.memory_space<smem>>
      %c49 = arith.constant 49 : index
      %75 = memref.load %arg4[%c49] : memref<98xf32, #tpu.memory_space<smem>>
      %c50 = arith.constant 50 : index
      %76 = memref.load %arg4[%c50] : memref<98xf32, #tpu.memory_space<smem>>
      %c51 = arith.constant 51 : index
      %77 = memref.load %arg4[%c51] : memref<98xf32, #tpu.memory_space<smem>>
      %c52 = arith.constant 52 : index
      %78 = memref.load %arg4[%c52] : memref<98xf32, #tpu.memory_space<smem>>
      %c53 = arith.constant 53 : index
      %79 = memref.load %arg4[%c53] : memref<98xf32, #tpu.memory_space<smem>>
      %c54 = arith.constant 54 : index
      %80 = memref.load %arg4[%c54] : memref<98xf32, #tpu.memory_space<smem>>
      %c55 = arith.constant 55 : index
      %81 = memref.load %arg4[%c55] : memref<98xf32, #tpu.memory_space<smem>>
      %c56 = arith.constant 56 : index
      %82 = memref.load %arg4[%c56] : memref<98xf32, #tpu.memory_space<smem>>
      %c57 = arith.constant 57 : index
      %83 = memref.load %arg4[%c57] : memref<98xf32, #tpu.memory_space<smem>>
      %c58 = arith.constant 58 : index
      %84 = memref.load %arg4[%c58] : memref<98xf32, #tpu.memory_space<smem>>
      %c59 = arith.constant 59 : index
      %85 = memref.load %arg4[%c59] : memref<98xf32, #tpu.memory_space<smem>>
      %c60 = arith.constant 60 : index
      %86 = memref.load %arg4[%c60] : memref<98xf32, #tpu.memory_space<smem>>
      %c61 = arith.constant 61 : index
      %87 = memref.load %arg4[%c61] : memref<98xf32, #tpu.memory_space<smem>>
      %c62 = arith.constant 62 : index
      %88 = memref.load %arg4[%c62] : memref<98xf32, #tpu.memory_space<smem>>
      %c63 = arith.constant 63 : index
      %89 = memref.load %arg4[%c63] : memref<98xf32, #tpu.memory_space<smem>>
      %c64 = arith.constant 64 : index
      %90 = memref.load %arg4[%c64] : memref<98xf32, #tpu.memory_space<smem>>
      %c65 = arith.constant 65 : index
      %91 = memref.load %arg4[%c65] : memref<98xf32, #tpu.memory_space<smem>>
      %c66 = arith.constant 66 : index
      %92 = memref.load %arg4[%c66] : memref<98xf32, #tpu.memory_space<smem>>
      %c67 = arith.constant 67 : index
      %93 = memref.load %arg4[%c67] : memref<98xf32, #tpu.memory_space<smem>>
      %c68 = arith.constant 68 : index
      %94 = memref.load %arg4[%c68] : memref<98xf32, #tpu.memory_space<smem>>
      %c69 = arith.constant 69 : index
      %95 = memref.load %arg4[%c69] : memref<98xf32, #tpu.memory_space<smem>>
      %c70 = arith.constant 70 : index
      %96 = memref.load %arg4[%c70] : memref<98xf32, #tpu.memory_space<smem>>
      %c71 = arith.constant 71 : index
      %97 = memref.load %arg4[%c71] : memref<98xf32, #tpu.memory_space<smem>>
      %c72 = arith.constant 72 : index
      %98 = memref.load %arg4[%c72] : memref<98xf32, #tpu.memory_space<smem>>
      %c73 = arith.constant 73 : index
      %99 = memref.load %arg4[%c73] : memref<98xf32, #tpu.memory_space<smem>>
      %c74 = arith.constant 74 : index
      %100 = memref.load %arg4[%c74] : memref<98xf32, #tpu.memory_space<smem>>
      %c75 = arith.constant 75 : index
      %101 = memref.load %arg4[%c75] : memref<98xf32, #tpu.memory_space<smem>>
      %c76 = arith.constant 76 : index
      %102 = memref.load %arg4[%c76] : memref<98xf32, #tpu.memory_space<smem>>
      %c77 = arith.constant 77 : index
      %103 = memref.load %arg4[%c77] : memref<98xf32, #tpu.memory_space<smem>>
      %c78 = arith.constant 78 : index
      %104 = memref.load %arg4[%c78] : memref<98xf32, #tpu.memory_space<smem>>
      %c79 = arith.constant 79 : index
      %105 = memref.load %arg4[%c79] : memref<98xf32, #tpu.memory_space<smem>>
      %c80 = arith.constant 80 : index
      %106 = memref.load %arg4[%c80] : memref<98xf32, #tpu.memory_space<smem>>
      %c81 = arith.constant 81 : index
      %107 = memref.load %arg4[%c81] : memref<98xf32, #tpu.memory_space<smem>>
      %c82 = arith.constant 82 : index
      %108 = memref.load %arg4[%c82] : memref<98xf32, #tpu.memory_space<smem>>
      %c83 = arith.constant 83 : index
      %109 = memref.load %arg4[%c83] : memref<98xf32, #tpu.memory_space<smem>>
      %c84 = arith.constant 84 : index
      %110 = memref.load %arg4[%c84] : memref<98xf32, #tpu.memory_space<smem>>
      %c85 = arith.constant 85 : index
      %111 = memref.load %arg4[%c85] : memref<98xf32, #tpu.memory_space<smem>>
      %c86 = arith.constant 86 : index
      %112 = memref.load %arg4[%c86] : memref<98xf32, #tpu.memory_space<smem>>
      %c87 = arith.constant 87 : index
      %113 = memref.load %arg4[%c87] : memref<98xf32, #tpu.memory_space<smem>>
      %c88 = arith.constant 88 : index
      %114 = memref.load %arg4[%c88] : memref<98xf32, #tpu.memory_space<smem>>
      %c89 = arith.constant 89 : index
      %115 = memref.load %arg4[%c89] : memref<98xf32, #tpu.memory_space<smem>>
      %c90 = arith.constant 90 : index
      %116 = memref.load %arg4[%c90] : memref<98xf32, #tpu.memory_space<smem>>
      %c91 = arith.constant 91 : index
      %117 = memref.load %arg4[%c91] : memref<98xf32, #tpu.memory_space<smem>>
      %c92 = arith.constant 92 : index
      %118 = memref.load %arg4[%c92] : memref<98xf32, #tpu.memory_space<smem>>
      %c93 = arith.constant 93 : index
      %119 = memref.load %arg4[%c93] : memref<98xf32, #tpu.memory_space<smem>>
      %c94 = arith.constant 94 : index
      %120 = memref.load %arg4[%c94] : memref<98xf32, #tpu.memory_space<smem>>
      %c95 = arith.constant 95 : index
      %121 = memref.load %arg4[%c95] : memref<98xf32, #tpu.memory_space<smem>>
      %c96 = arith.constant 96 : index
      %122 = memref.load %arg4[%c96] : memref<98xf32, #tpu.memory_space<smem>>
      %c97 = arith.constant 97 : index
      %123 = memref.load %arg4[%c97] : memref<98xf32, #tpu.memory_space<smem>>
      %cst = arith.constant 0.000000e+00 : f32
      %124 = vector.broadcast %cst : f32 to vector<2x358xf32>
      %c0_23 = arith.constant 0 : index
      %c0_24 = arith.constant 0 : index
      %125 = vector.load %arg8[%c0_23, %c0_24] : memref<2x358xf32, #tpu.memory_space<vmem>>, vector<2x358xf32>
      tpu.vector_store %arg8[%c0_23, %c0_24], %124 {strides = array<i32>} : memref<2x358xf32, #tpu.memory_space<vmem>>, vector<2x358xf32>,
      %cst_25 = arith.constant 0.000000e+00 : f32
      %126 = vector.broadcast %cst_25 : f32 to vector<2x358xf32>
      %c0_26 = arith.constant 0 : index
      %c0_27 = arith.constant 0 : index
      %127 = vector.load %arg9[%c0_26, %c0_27] : memref<2x358xf32, #tpu.memory_space<vmem>>, vector<2x358xf32>
      tpu.vector_store %arg9[%c0_26, %c0_27], %126 {strides = array<i32>} : memref<2x358xf32, #tpu.memory_space<vmem>>, vector<2x358xf32>,
      %c0_28 = arith.constant 0 : index
      %c0_29 = arith.constant 0 : index
      %128 = vector.load %arg6[%c0_28, %c0_29] : memref<2x256xf32, #tpu.memory_space<vmem>>, vector<2x256xf32>
      %cst_30 = arith.constant 2.500000e-01 : f32
      %129 = vector.broadcast %cst_30 : f32 to vector<2x256xf32>
      %130 = arith.mulf %128, %129 : vector<2x256xf32>
      %c0_31 = arith.constant 0 : index
      %c51_32 = arith.constant 51 : index
      %131 = vector.load %arg8[%c0_31, %c51_32] : memref<2x358xf32, #tpu.memory_space<vmem>>, vector<2x256xf32>
      tpu.vector_store %arg8[%c0_31, %c51_32], %130 {strides = array<i32>} : memref<2x358xf32, #tpu.memory_space<vmem>>, vector<2x256xf32>,
      %c0_33 = arith.constant 0 : index
      %c0_34 = arith.constant 0 : index
      %132 = vector.load %arg7[%c0_33, %c0_34] : memref<2x256xf32, #tpu.memory_space<vmem>>, vector<2x256xf32>
      %c0_35 = arith.constant 0 : index
      %c51_36 = arith.constant 51 : index
      %133 = vector.load %arg9[%c0_35, %c51_36] : memref<2x358xf32, #tpu.memory_space<vmem>>, vector<2x256xf32>
      tpu.vector_store %arg9[%c0_35, %c51_36], %132 {strides = array<i32>} : memref<2x358xf32, #tpu.memory_space<vmem>>, vector<2x256xf32>,
      %cst_37 = arith.constant 0.000000e+00 : f32
      %134 = vector.broadcast %cst_37 : f32 to vector<2x256xf32>
      %cst_38 = arith.constant 0.000000e+00 : f32
      %135 = vector.broadcast %cst_38 : f32 to vector<2x256xf32>
      %cst_39 = arith.constant 0.000000e+00 : f32
      %136 = vector.broadcast %cst_39 : f32 to vector<2x256xf32>
      %cst_40 = arith.constant 0.000000e+00 : f32
      %137 = vector.broadcast %cst_40 : f32 to vector<2x256xf32>
      %c0_41 = arith.constant 0 : index
      %c0_42 = arith.constant 0 : index
      %138 = vector.load %arg3[%c0_41, %c0_42] : memref<7x256xf32, #tpu.memory_space<vmem>>, vector<1x256xf32>
      %cst_43 = arith.constant 0.000000e+00 : f32
      %139 = vector.broadcast %cst_43 : f32 to vector<2x256xf32>
      %cst_44 = arith.constant 0.000000e+00 : f32
      %140 = vector.broadcast %cst_44 : f32 to vector<2x256xf32>
      %c0_45 = arith.constant 0 : index
      %c0_46 = arith.constant 0 : index
      %141 = vector.load %arg8[%c0_45, %c0_46] : memref<2x358xf32, #tpu.memory_space<vmem>>, vector<2x256xf32>
      %142 = vector.broadcast %26 : f32 to vector<2x256xf32>
      %143 = arith.mulf %141, %142 : vector<2x256xf32>
      %144 = arith.addf %139, %143 : vector<2x256xf32>
      %c0_47 = arith.constant 0 : index
      %c0_48 = arith.constant 0 : index
      %145 = vector.load %arg9[%c0_47, %c0_48] : memref<2x358xf32, #tpu.memory_space<vmem>>, vector<2x256xf32>
      %146 = vector.broadcast %75 : f32 to vector<2x256xf32>
      %147 = arith.mulf %145, %146 : vector<2x256xf32>
      %148 = arith.addf %140, %147 : vector<2x256xf32>
      %c0_49 = arith.constant 0 : index
      %c16_50 = arith.constant 16 : index
      %149 = vector.load %arg8[%c0_49, %c16_50] : memref<2x358xf32, #tpu.memory_space<vmem>>, vector<2x256xf32>
      %150 = vector.broadcast %33 : f32 to vector<2x256xf32>
      %151 = arith.mulf %149, %150 : vector<2x256xf32>
      %152 = arith.addf %144, %151 : vector<2x256xf32>
      %c0_51 = arith.constant 0 : index
      %c16_52 = arith.constant 16 : index
      %153 = vector.load %arg9[%c0_51, %c16_52] : memref<2x358xf32, #tpu.memory_space<vmem>>, vector<2x256xf32>
      %154 = vector.broadcast %82 : f32 to vector<2x256xf32>
      %155 = arith.mulf %153, %154 : vector<2x256xf32>
      %156 = arith.addf %148, %155 : vector<2x256xf32>
      %c0_53 = arith.constant 0 : index
      %c32_54 = arith.constant 32 : index
      %157 = vector.load %arg8[%c0_53, %c32_54] : memref<2x358xf32, #tpu.memory_space<vmem>>, vector<2x256xf32>
      %158 = vector.broadcast %40 : f32 to vector<2x256xf32>
      %159 = arith.mulf %157, %158 : vector<2x256xf32>
      %160 = arith.addf %152, %159 : vector<2x256xf32>
      %c0_55 = arith.constant 0 : index
      %c32_56 = arith.constant 32 : index
      %161 = vector.load %arg9[%c0_55, %c32_56] : memref<2x358xf32, #tpu.memory_space<vmem>>, vector<2x256xf32>
      %162 = vector.broadcast %89 : f32 to vector<2x256xf32>
      %163 = arith.mulf %161, %162 : vector<2x256xf32>
      %164 = arith.addf %156, %163 : vector<2x256xf32>
      %c0_57 = arith.constant 0 : index
      %c48_58 = arith.constant 48 : index
      %165 = vector.load %arg8[%c0_57, %c48_58] : memref<2x358xf32, #tpu.memory_space<vmem>>, vector<2x256xf32>
      %166 = vector.broadcast %47 : f32 to vector<2x256xf32>
      %167 = arith.mulf %165, %166 : vector<2x256xf32>
      %168 = arith.addf %160, %167 : vector<2x256xf32>
      %c0_59 = arith.constant 0 : index
      %c48_60 = arith.constant 48 : index
      %169 = vector.load %arg9[%c0_59, %c48_60] : memref<2x358xf32, #tpu.memory_space<vmem>>, vector<2x256xf32>
      %170 = vector.broadcast %96 : f32 to vector<2x256xf32>
      %171 = arith.mulf %169, %170 : vector<2x256xf32>
      %172 = arith.addf %164, %171 : vector<2x256xf32>
      %c0_61 = arith.constant 0 : index
      %c64_62 = arith.constant 64 : index
      %173 = vector.load %arg8[%c0_61, %c64_62] : memref<2x358xf32, #tpu.memory_space<vmem>>, vector<2x256xf32>
      %174 = vector.broadcast %54 : f32 to vector<2x256xf32>
      %175 = arith.mulf %173, %174 : vector<2x256xf32>
      %176 = arith.addf %168, %175 : vector<2x256xf32>
      %c0_63 = arith.constant 0 : index
      %c64_64 = arith.constant 64 : index
      %177 = vector.load %arg9[%c0_63, %c64_64] : memref<2x358xf32, #tpu.memory_space<vmem>>, vector<2x256xf32>
      %178 = vector.broadcast %103 : f32 to vector<2x256xf32>
      %179 = arith.mulf %177, %178 : vector<2x256xf32>
      %180 = arith.addf %172, %179 : vector<2x256xf32>
      %c0_65 = arith.constant 0 : index
      %c80_66 = arith.constant 80 : index
      %181 = vector.load %arg8[%c0_65, %c80_66] : memref<2x358xf32, #tpu.memory_space<vmem>>, vector<2x256xf32>
      %182 = vector.broadcast %61 : f32 to vector<2x256xf32>
      %183 = arith.mulf %181, %182 : vector<2x256xf32>
      %184 = arith.addf %176, %183 : vector<2x256xf32>
      %c0_67 = arith.constant 0 : index
      %c80_68 = arith.constant 80 : index
      %185 = vector.load %arg9[%c0_67, %c80_68] : memref<2x358xf32, #tpu.memory_space<vmem>>, vector<2x256xf32>
      %186 = vector.broadcast %110 : f32 to vector<2x256xf32>
      %187 = arith.mulf %185, %186 : vector<2x256xf32>
      %188 = arith.addf %180, %187 : vector<2x256xf32>
      %c0_69 = arith.constant 0 : index
      %c96_70 = arith.constant 96 : index
      %189 = vector.load %arg8[%c0_69, %c96_70] : memref<2x358xf32, #tpu.memory_space<vmem>>, vector<2x256xf32>
      %190 = vector.broadcast %68 : f32 to vector<2x256xf32>
      %191 = arith.mulf %189, %190 : vector<2x256xf32>
      %192 = arith.addf %184, %191 : vector<2x256xf32>
      %c0_71 = arith.constant 0 : index
      %c96_72 = arith.constant 96 : index
      %193 = vector.load %arg9[%c0_71, %c96_72] : memref<2x358xf32, #tpu.memory_space<vmem>>, vector<2x256xf32>
      %194 = vector.broadcast %117 : f32 to vector<2x256xf32>
      %195 = arith.mulf %193, %194 : vector<2x256xf32>
      %196 = arith.addf %188, %195 : vector<2x256xf32>
      %197 = arith.addf %192, %196 : vector<2x256xf32>
      %198 = vector.broadcast %138 : vector<1x256xf32> to vector<2x256xf32>
      %199 = arith.mulf %198, %197 : vector<2x256xf32>
      %200 = arith.addf %134, %199 : vector<2x256xf32>
      %c1_73 = arith.constant 1 : index
      %c0_74 = arith.constant 0 : index
      %201 = vector.load %arg3[%c1_73, %c0_74] : memref<7x256xf32, #tpu.memory_space<vmem>>, vector<1x256xf32>
      %cst_75 = arith.constant 0.000000e+00 : f32
      %202 = vector.broadcast %cst_75 : f32 to vector<2x256xf32>
      %cst_76 = arith.constant 0.000000e+00 : f32
      %203 = vector.broadcast %cst_76 : f32 to vector<2x256xf32>
      %c0_77 = arith.constant 0 : index
      %c1_78 = arith.constant 1 : index
      %204 = vector.load %arg8[%c0_77, %c1_78] : memref<2x358xf32, #tpu.memory_space<vmem>>, vector<2x256xf32>
      %205 = vector.broadcast %27 : f32 to vector<2x256xf32>
      %206 = arith.mulf %204, %205 : vector<2x256xf32>
      %207 = arith.addf %202, %206 : vector<2x256xf32>
      %c0_79 = arith.constant 0 : index
      %c1_80 = arith.constant 1 : index
      %208 = vector.load %arg9[%c0_79, %c1_80] : memref<2x358xf32, #tpu.memory_space<vmem>>, vector<2x256xf32>
      %209 = vector.broadcast %76 : f32 to vector<2x256xf32>
      %210 = arith.mulf %208, %209 : vector<2x256xf32>
      %211 = arith.addf %203, %210 : vector<2x256xf32>
      %c0_81 = arith.constant 0 : index
      %c17_82 = arith.constant 17 : index
      %212 = vector.load %arg8[%c0_81, %c17_82] : memref<2x358xf32, #tpu.memory_space<vmem>>, vector<2x256xf32>
      %213 = vector.broadcast %34 : f32 to vector<2x256xf32>
      %214 = arith.mulf %212, %213 : vector<2x256xf32>
      %215 = arith.addf %207, %214 : vector<2x256xf32>
      %c0_83 = arith.constant 0 : index
      %c17_84 = arith.constant 17 : index
      %216 = vector.load %arg9[%c0_83, %c17_84] : memref<2x358xf32, #tpu.memory_space<vmem>>, vector<2x256xf32>
      %217 = vector.broadcast %83 : f32 to vector<2x256xf32>
      %218 = arith.mulf %216, %217 : vector<2x256xf32>
      %219 = arith.addf %211, %218 : vector<2x256xf32>
      %c0_85 = arith.constant 0 : index
      %c33_86 = arith.constant 33 : index
      %220 = vector.load %arg8[%c0_85, %c33_86] : memref<2x358xf32, #tpu.memory_space<vmem>>, vector<2x256xf32>
      %221 = vector.broadcast %41 : f32 to vector<2x256xf32>
      %222 = arith.mulf %220, %221 : vector<2x256xf32>
      %223 = arith.addf %215, %222 : vector<2x256xf32>
      %c0_87 = arith.constant 0 : index
      %c33_88 = arith.constant 33 : index
      %224 = vector.load %arg9[%c0_87, %c33_88] : memref<2x358xf32, #tpu.memory_space<vmem>>, vector<2x256xf32>
      %225 = vector.broadcast %90 : f32 to vector<2x256xf32>
      %226 = arith.mulf %224, %225 : vector<2x256xf32>
      %227 = arith.addf %219, %226 : vector<2x256xf32>
      %c0_89 = arith.constant 0 : index
      %c49_90 = arith.constant 49 : index
      %228 = vector.load %arg8[%c0_89, %c49_90] : memref<2x358xf32, #tpu.memory_space<vmem>>, vector<2x256xf32>
      %229 = vector.broadcast %48 : f32 to vector<2x256xf32>
      %230 = arith.mulf %228, %229 : vector<2x256xf32>
      %231 = arith.addf %223, %230 : vector<2x256xf32>
      %c0_91 = arith.constant 0 : index
      %c49_92 = arith.constant 49 : index
      %232 = vector.load %arg9[%c0_91, %c49_92] : memref<2x358xf32, #tpu.memory_space<vmem>>, vector<2x256xf32>
      %233 = vector.broadcast %97 : f32 to vector<2x256xf32>
      %234 = arith.mulf %232, %233 : vector<2x256xf32>
      %235 = arith.addf %227, %234 : vector<2x256xf32>
      %c0_93 = arith.constant 0 : index
      %c65_94 = arith.constant 65 : index
      %236 = vector.load %arg8[%c0_93, %c65_94] : memref<2x358xf32, #tpu.memory_space<vmem>>, vector<2x256xf32>
      %237 = vector.broadcast %55 : f32 to vector<2x256xf32>
      %238 = arith.mulf %236, %237 : vector<2x256xf32>
      %239 = arith.addf %231, %238 : vector<2x256xf32>
      %c0_95 = arith.constant 0 : index
      %c65_96 = arith.constant 65 : index
      %240 = vector.load %arg9[%c0_95, %c65_96] : memref<2x358xf32, #tpu.memory_space<vmem>>, vector<2x256xf32>
      %241 = vector.broadcast %104 : f32 to vector<2x256xf32>
      %242 = arith.mulf %240, %241 : vector<2x256xf32>
      %243 = arith.addf %235, %242 : vector<2x256xf32>
      %c0_97 = arith.constant 0 : index
      %c81_98 = arith.constant 81 : index
      %244 = vector.load %arg8[%c0_97, %c81_98] : memref<2x358xf32, #tpu.memory_space<vmem>>, vector<2x256xf32>
      %245 = vector.broadcast %62 : f32 to vector<2x256xf32>
      %246 = arith.mulf %244, %245 : vector<2x256xf32>
      %247 = arith.addf %239, %246 : vector<2x256xf32>
      %c0_99 = arith.constant 0 : index
      %c81_100 = arith.constant 81 : index
      %248 = vector.load %arg9[%c0_99, %c81_100] : memref<2x358xf32, #tpu.memory_space<vmem>>, vector<2x256xf32>
      %249 = vector.broadcast %111 : f32 to vector<2x256xf32>
      %250 = arith.mulf %248, %249 : vector<2x256xf32>
      %251 = arith.addf %243, %250 : vector<2x256xf32>
      %c0_101 = arith.constant 0 : index
      %c97_102 = arith.constant 97 : index
      %252 = vector.load %arg8[%c0_101, %c97_102] : memref<2x358xf32, #tpu.memory_space<vmem>>, vector<2x256xf32>
      %253 = vector.broadcast %69 : f32 to vector<2x256xf32>
      %254 = arith.mulf %252, %253 : vector<2x256xf32>
      %255 = arith.addf %247, %254 : vector<2x256xf32>
      %c0_103 = arith.constant 0 : index
      %c97_104 = arith.constant 97 : index
      %256 = vector.load %arg9[%c0_103, %c97_104] : memref<2x358xf32, #tpu.memory_space<vmem>>, vector<2x256xf32>
      %257 = vector.broadcast %118 : f32 to vector<2x256xf32>
      %258 = arith.mulf %256, %257 : vector<2x256xf32>
      %259 = arith.addf %251, %258 : vector<2x256xf32>
      %260 = arith.addf %255, %259 : vector<2x256xf32>
      %261 = vector.broadcast %201 : vector<1x256xf32> to vector<2x256xf32>
      %262 = arith.mulf %261, %260 : vector<2x256xf32>
      %263 = arith.addf %135, %262 : vector<2x256xf32>
      %c2_105 = arith.constant 2 : index
      %c0_106 = arith.constant 0 : index
      %264 = vector.load %arg3[%c2_105, %c0_106] : memref<7x256xf32, #tpu.memory_space<vmem>>, vector<1x256xf32>
      %cst_107 = arith.constant 0.000000e+00 : f32
      %265 = vector.broadcast %cst_107 : f32 to vector<2x256xf32>
      %cst_108 = arith.constant 0.000000e+00 : f32
      %266 = vector.broadcast %cst_108 : f32 to vector<2x256xf32>
      %c0_109 = arith.constant 0 : index
      %c2_110 = arith.constant 2 : index
      %267 = vector.load %arg8[%c0_109, %c2_110] : memref<2x358xf32, #tpu.memory_space<vmem>>, vector<2x256xf32>
      %268 = vector.broadcast %28 : f32 to vector<2x256xf32>
      %269 = arith.mulf %267, %268 : vector<2x256xf32>
      %270 = arith.addf %265, %269 : vector<2x256xf32>
      %c0_111 = arith.constant 0 : index
      %c2_112 = arith.constant 2 : index
      %271 = vector.load %arg9[%c0_111, %c2_112] : memref<2x358xf32, #tpu.memory_space<vmem>>, vector<2x256xf32>
      %272 = vector.broadcast %77 : f32 to vector<2x256xf32>
      %273 = arith.mulf %271, %272 : vector<2x256xf32>
      %274 = arith.addf %266, %273 : vector<2x256xf32>
      %c0_113 = arith.constant 0 : index
      %c18_114 = arith.constant 18 : index
      %275 = vector.load %arg8[%c0_113, %c18_114] : memref<2x358xf32, #tpu.memory_space<vmem>>, vector<2x256xf32>
      %276 = vector.broadcast %35 : f32 to vector<2x256xf32>
      %277 = arith.mulf %275, %276 : vector<2x256xf32>
      %278 = arith.addf %270, %277 : vector<2x256xf32>
      %c0_115 = arith.constant 0 : index
      %c18_116 = arith.constant 18 : index
      %279 = vector.load %arg9[%c0_115, %c18_116] : memref<2x358xf32, #tpu.memory_space<vmem>>, vector<2x256xf32>
      %280 = vector.broadcast %84 : f32 to vector<2x256xf32>
      %281 = arith.mulf %279, %280 : vector<2x256xf32>
      %282 = arith.addf %274, %281 : vector<2x256xf32>
      %c0_117 = arith.constant 0 : index
      %c34_118 = arith.constant 34 : index
      %283 = vector.load %arg8[%c0_117, %c34_118] : memref<2x358xf32, #tpu.memory_space<vmem>>, vector<2x256xf32>
      %284 = vector.broadcast %42 : f32 to vector<2x256xf32>
      %285 = arith.mulf %283, %284 : vector<2x256xf32>
      %286 = arith.addf %278, %285 : vector<2x256xf32>
      %c0_119 = arith.constant 0 : index
      %c34_120 = arith.constant 34 : index
      %287 = vector.load %arg9[%c0_119, %c34_120] : memref<2x358xf32, #tpu.memory_space<vmem>>, vector<2x256xf32>
      %288 = vector.broadcast %91 : f32 to vector<2x256xf32>
      %289 = arith.mulf %287, %288 : vector<2x256xf32>
      %290 = arith.addf %282, %289 : vector<2x256xf32>
      %c0_121 = arith.constant 0 : index
      %c50_122 = arith.constant 50 : index
      %291 = vector.load %arg8[%c0_121, %c50_122] : memref<2x358xf32, #tpu.memory_space<vmem>>, vector<2x256xf32>
      %292 = vector.broadcast %49 : f32 to vector<2x256xf32>
      %293 = arith.mulf %291, %292 : vector<2x256xf32>
      %294 = arith.addf %286, %293 : vector<2x256xf32>
      %c0_123 = arith.constant 0 : index
      %c50_124 = arith.constant 50 : index
      %295 = vector.load %arg9[%c0_123, %c50_124] : memref<2x358xf32, #tpu.memory_space<vmem>>, vector<2x256xf32>
      %296 = vector.broadcast %98 : f32 to vector<2x256xf32>
      %297 = arith.mulf %295, %296 : vector<2x256xf32>
      %298 = arith.addf %290, %297 : vector<2x256xf32>
      %c0_125 = arith.constant 0 : index
      %c66_126 = arith.constant 66 : index
      %299 = vector.load %arg8[%c0_125, %c66_126] : memref<2x358xf32, #tpu.memory_space<vmem>>, vector<2x256xf32>
      %300 = vector.broadcast %56 : f32 to vector<2x256xf32>
      %301 = arith.mulf %299, %300 : vector<2x256xf32>
      %302 = arith.addf %294, %301 : vector<2x256xf32>
      %c0_127 = arith.constant 0 : index
      %c66_128 = arith.constant 66 : index
      %303 = vector.load %arg9[%c0_127, %c66_128] : memref<2x358xf32, #tpu.memory_space<vmem>>, vector<2x256xf32>
      %304 = vector.broadcast %105 : f32 to vector<2x256xf32>
      %305 = arith.mulf %303, %304 : vector<2x256xf32>
      %306 = arith.addf %298, %305 : vector<2x256xf32>
      %c0_129 = arith.constant 0 : index
      %c82_130 = arith.constant 82 : index
      %307 = vector.load %arg8[%c0_129, %c82_130] : memref<2x358xf32, #tpu.memory_space<vmem>>, vector<2x256xf32>
      %308 = vector.broadcast %63 : f32 to vector<2x256xf32>
      %309 = arith.mulf %307, %308 : vector<2x256xf32>
      %310 = arith.addf %302, %309 : vector<2x256xf32>
      %c0_131 = arith.constant 0 : index
      %c82_132 = arith.constant 82 : index
      %311 = vector.load %arg9[%c0_131, %c82_132] : memref<2x358xf32, #tpu.memory_space<vmem>>, vector<2x256xf32>
      %312 = vector.broadcast %112 : f32 to vector<2x256xf32>
      %313 = arith.mulf %311, %312 : vector<2x256xf32>
      %314 = arith.addf %306, %313 : vector<2x256xf32>
      %c0_133 = arith.constant 0 : index
      %c98 = arith.constant 98 : index
      %315 = vector.load %arg8[%c0_133, %c98] : memref<2x358xf32, #tpu.memory_space<vmem>>, vector<2x256xf32>
      %316 = vector.broadcast %70 : f32 to vector<2x256xf32>
      %317 = arith.mulf %315, %316 : vector<2x256xf32>
      %318 = arith.addf %310, %317 : vector<2x256xf32>
      %c0_134 = arith.constant 0 : index
      %c98_135 = arith.constant 98 : index
      %319 = vector.load %arg9[%c0_134, %c98_135] : memref<2x358xf32, #tpu.memory_space<vmem>>, vector<2x256xf32>
      %320 = vector.broadcast %119 : f32 to vector<2x256xf32>
      %321 = arith.mulf %319, %320 : vector<2x256xf32>
      %322 = arith.addf %314, %321 : vector<2x256xf32>
      %323 = arith.addf %318, %322 : vector<2x256xf32>
      %324 = vector.broadcast %264 : vector<1x256xf32> to vector<2x256xf32>
      %325 = arith.mulf %324, %323 : vector<2x256xf32>
      %326 = arith.addf %136, %325 : vector<2x256xf32>
      %c3_136 = arith.constant 3 : index
      %c0_137 = arith.constant 0 : index
      %327 = vector.load %arg3[%c3_136, %c0_137] : memref<7x256xf32, #tpu.memory_space<vmem>>, vector<1x256xf32>
      %cst_138 = arith.constant 0.000000e+00 : f32
      %328 = vector.broadcast %cst_138 : f32 to vector<2x256xf32>
      %cst_139 = arith.constant 0.000000e+00 : f32
      %329 = vector.broadcast %cst_139 : f32 to vector<2x256xf32>
      %c0_140 = arith.constant 0 : index
      %c3_141 = arith.constant 3 : index
      %330 = vector.load %arg8[%c0_140, %c3_141] : memref<2x358xf32, #tpu.memory_space<vmem>>, vector<2x256xf32>
      %331 = vector.broadcast %29 : f32 to vector<2x256xf32>
      %332 = arith.mulf %330, %331 : vector<2x256xf32>
      %333 = arith.addf %328, %332 : vector<2x256xf32>
      %c0_142 = arith.constant 0 : index
      %c3_143 = arith.constant 3 : index
      %334 = vector.load %arg9[%c0_142, %c3_143] : memref<2x358xf32, #tpu.memory_space<vmem>>, vector<2x256xf32>
      %335 = vector.broadcast %78 : f32 to vector<2x256xf32>
      %336 = arith.mulf %334, %335 : vector<2x256xf32>
      %337 = arith.addf %329, %336 : vector<2x256xf32>
      %c0_144 = arith.constant 0 : index
      %c19_145 = arith.constant 19 : index
      %338 = vector.load %arg8[%c0_144, %c19_145] : memref<2x358xf32, #tpu.memory_space<vmem>>, vector<2x256xf32>
      %339 = vector.broadcast %36 : f32 to vector<2x256xf32>
      %340 = arith.mulf %338, %339 : vector<2x256xf32>
      %341 = arith.addf %333, %340 : vector<2x256xf32>
      %c0_146 = arith.constant 0 : index
      %c19_147 = arith.constant 19 : index
      %342 = vector.load %arg9[%c0_146, %c19_147] : memref<2x358xf32, #tpu.memory_space<vmem>>, vector<2x256xf32>
      %343 = vector.broadcast %85 : f32 to vector<2x256xf32>
      %344 = arith.mulf %342, %343 : vector<2x256xf32>
      %345 = arith.addf %337, %344 : vector<2x256xf32>
      %c0_148 = arith.constant 0 : index
      %c35_149 = arith.constant 35 : index
      %346 = vector.load %arg8[%c0_148, %c35_149] : memref<2x358xf32, #tpu.memory_space<vmem>>, vector<2x256xf32>
      %347 = vector.broadcast %43 : f32 to vector<2x256xf32>
      %348 = arith.mulf %346, %347 : vector<2x256xf32>
      %349 = arith.addf %341, %348 : vector<2x256xf32>
      %c0_150 = arith.constant 0 : index
      %c35_151 = arith.constant 35 : index
      %350 = vector.load %arg9[%c0_150, %c35_151] : memref<2x358xf32, #tpu.memory_space<vmem>>, vector<2x256xf32>
      %351 = vector.broadcast %92 : f32 to vector<2x256xf32>
      %352 = arith.mulf %350, %351 : vector<2x256xf32>
      %353 = arith.addf %345, %352 : vector<2x256xf32>
      %c0_152 = arith.constant 0 : index
      %c51_153 = arith.constant 51 : index
      %354 = vector.load %arg8[%c0_152, %c51_153] : memref<2x358xf32, #tpu.memory_space<vmem>>, vector<2x256xf32>
      %355 = vector.broadcast %50 : f32 to vector<2x256xf32>
      %356 = arith.mulf %354, %355 : vector<2x256xf32>
      %357 = arith.addf %349, %356 : vector<2x256xf32>
      %c0_154 = arith.constant 0 : index
      %c51_155 = arith.constant 51 : index
      %358 = vector.load %arg9[%c0_154, %c51_155] : memref<2x358xf32, #tpu.memory_space<vmem>>, vector<2x256xf32>
      %359 = vector.broadcast %99 : f32 to vector<2x256xf32>
      %360 = arith.mulf %358, %359 : vector<2x256xf32>
      %361 = arith.addf %353, %360 : vector<2x256xf32>
      %c0_156 = arith.constant 0 : index
      %c67_157 = arith.constant 67 : index
      %362 = vector.load %arg8[%c0_156, %c67_157] : memref<2x358xf32, #tpu.memory_space<vmem>>, vector<2x256xf32>
      %363 = vector.broadcast %57 : f32 to vector<2x256xf32>
      %364 = arith.mulf %362, %363 : vector<2x256xf32>
      %365 = arith.addf %357, %364 : vector<2x256xf32>
      %c0_158 = arith.constant 0 : index
      %c67_159 = arith.constant 67 : index
      %366 = vector.load %arg9[%c0_158, %c67_159] : memref<2x358xf32, #tpu.memory_space<vmem>>, vector<2x256xf32>
      %367 = vector.broadcast %106 : f32 to vector<2x256xf32>
      %368 = arith.mulf %366, %367 : vector<2x256xf32>
      %369 = arith.addf %361, %368 : vector<2x256xf32>
      %c0_160 = arith.constant 0 : index
      %c83_161 = arith.constant 83 : index
      %370 = vector.load %arg8[%c0_160, %c83_161] : memref<2x358xf32, #tpu.memory_space<vmem>>, vector<2x256xf32>
      %371 = vector.broadcast %64 : f32 to vector<2x256xf32>
      %372 = arith.mulf %370, %371 : vector<2x256xf32>
      %373 = arith.addf %365, %372 : vector<2x256xf32>
      %c0_162 = arith.constant 0 : index
      %c83_163 = arith.constant 83 : index
      %374 = vector.load %arg9[%c0_162, %c83_163] : memref<2x358xf32, #tpu.memory_space<vmem>>, vector<2x256xf32>
      %375 = vector.broadcast %113 : f32 to vector<2x256xf32>
      %376 = arith.mulf %374, %375 : vector<2x256xf32>
      %377 = arith.addf %369, %376 : vector<2x256xf32>
      %c0_164 = arith.constant 0 : index
      %c99 = arith.constant 99 : index
      %378 = vector.load %arg8[%c0_164, %c99] : memref<2x358xf32, #tpu.memory_space<vmem>>, vector<2x256xf32>
      %379 = vector.broadcast %71 : f32 to vector<2x256xf32>
      %380 = arith.mulf %378, %379 : vector<2x256xf32>
      %381 = arith.addf %373, %380 : vector<2x256xf32>
      %c0_165 = arith.constant 0 : index
      %c99_166 = arith.constant 99 : index
      %382 = vector.load %arg9[%c0_165, %c99_166] : memref<2x358xf32, #tpu.memory_space<vmem>>, vector<2x256xf32>
      %383 = vector.broadcast %120 : f32 to vector<2x256xf32>
      %384 = arith.mulf %382, %383 : vector<2x256xf32>
      %385 = arith.addf %377, %384 : vector<2x256xf32>
      %386 = arith.addf %381, %385 : vector<2x256xf32>
      %387 = vector.broadcast %327 : vector<1x256xf32> to vector<2x256xf32>
      %388 = arith.mulf %387, %386 : vector<2x256xf32>
      %389 = arith.addf %137, %388 : vector<2x256xf32>
      %c4_167 = arith.constant 4 : index
      %c0_168 = arith.constant 0 : index
      %390 = vector.load %arg3[%c4_167, %c0_168] : memref<7x256xf32, #tpu.memory_space<vmem>>, vector<1x256xf32>
      %cst_169 = arith.constant 0.000000e+00 : f32
      %391 = vector.broadcast %cst_169 : f32 to vector<2x256xf32>
      %cst_170 = arith.constant 0.000000e+00 : f32
      %392 = vector.broadcast %cst_170 : f32 to vector<2x256xf32>
      %c0_171 = arith.constant 0 : index
      %c4_172 = arith.constant 4 : index
      %393 = vector.load %arg8[%c0_171, %c4_172] : memref<2x358xf32, #tpu.memory_space<vmem>>, vector<2x256xf32>
      %394 = vector.broadcast %30 : f32 to vector<2x256xf32>
      %395 = arith.mulf %393, %394 : vector<2x256xf32>
      %396 = arith.addf %391, %395 : vector<2x256xf32>
      %c0_173 = arith.constant 0 : index
      %c4_174 = arith.constant 4 : index
      %397 = vector.load %arg9[%c0_173, %c4_174] : memref<2x358xf32, #tpu.memory_space<vmem>>, vector<2x256xf32>
      %398 = vector.broadcast %79 : f32 to vector<2x256xf32>
      %399 = arith.mulf %397, %398 : vector<2x256xf32>
      %400 = arith.addf %392, %399 : vector<2x256xf32>
      %c0_175 = arith.constant 0 : index
      %c20_176 = arith.constant 20 : index
      %401 = vector.load %arg8[%c0_175, %c20_176] : memref<2x358xf32, #tpu.memory_space<vmem>>, vector<2x256xf32>
      %402 = vector.broadcast %37 : f32 to vector<2x256xf32>
      %403 = arith.mulf %401, %402 : vector<2x256xf32>
      %404 = arith.addf %396, %403 : vector<2x256xf32>
      %c0_177 = arith.constant 0 : index
      %c20_178 = arith.constant 20 : index
      %405 = vector.load %arg9[%c0_177, %c20_178] : memref<2x358xf32, #tpu.memory_space<vmem>>, vector<2x256xf32>
      %406 = vector.broadcast %86 : f32 to vector<2x256xf32>
      %407 = arith.mulf %405, %406 : vector<2x256xf32>
      %408 = arith.addf %400, %407 : vector<2x256xf32>
      %c0_179 = arith.constant 0 : index
      %c36_180 = arith.constant 36 : index
      %409 = vector.load %arg8[%c0_179, %c36_180] : memref<2x358xf32, #tpu.memory_space<vmem>>, vector<2x256xf32>
      %410 = vector.broadcast %44 : f32 to vector<2x256xf32>
      %411 = arith.mulf %409, %410 : vector<2x256xf32>
      %412 = arith.addf %404, %411 : vector<2x256xf32>
      %c0_181 = arith.constant 0 : index
      %c36_182 = arith.constant 36 : index
      %413 = vector.load %arg9[%c0_181, %c36_182] : memref<2x358xf32, #tpu.memory_space<vmem>>, vector<2x256xf32>
      %414 = vector.broadcast %93 : f32 to vector<2x256xf32>
      %415 = arith.mulf %413, %414 : vector<2x256xf32>
      %416 = arith.addf %408, %415 : vector<2x256xf32>
      %c0_183 = arith.constant 0 : index
      %c52_184 = arith.constant 52 : index
      %417 = vector.load %arg8[%c0_183, %c52_184] : memref<2x358xf32, #tpu.memory_space<vmem>>, vector<2x256xf32>
      %418 = vector.broadcast %51 : f32 to vector<2x256xf32>
      %419 = arith.mulf %417, %418 : vector<2x256xf32>
      %420 = arith.addf %412, %419 : vector<2x256xf32>
      %c0_185 = arith.constant 0 : index
      %c52_186 = arith.constant 52 : index
      %421 = vector.load %arg9[%c0_185, %c52_186] : memref<2x358xf32, #tpu.memory_space<vmem>>, vector<2x256xf32>
      %422 = vector.broadcast %100 : f32 to vector<2x256xf32>
      %423 = arith.mulf %421, %422 : vector<2x256xf32>
      %424 = arith.addf %416, %423 : vector<2x256xf32>
      %c0_187 = arith.constant 0 : index
      %c68_188 = arith.constant 68 : index
      %425 = vector.load %arg8[%c0_187, %c68_188] : memref<2x358xf32, #tpu.memory_space<vmem>>, vector<2x256xf32>
      %426 = vector.broadcast %58 : f32 to vector<2x256xf32>
      %427 = arith.mulf %425, %426 : vector<2x256xf32>
      %428 = arith.addf %420, %427 : vector<2x256xf32>
      %c0_189 = arith.constant 0 : index
      %c68_190 = arith.constant 68 : index
      %429 = vector.load %arg9[%c0_189, %c68_190] : memref<2x358xf32, #tpu.memory_space<vmem>>, vector<2x256xf32>
      %430 = vector.broadcast %107 : f32 to vector<2x256xf32>
      %431 = arith.mulf %429, %430 : vector<2x256xf32>
      %432 = arith.addf %424, %431 : vector<2x256xf32>
      %c0_191 = arith.constant 0 : index
      %c84_192 = arith.constant 84 : index
      %433 = vector.load %arg8[%c0_191, %c84_192] : memref<2x358xf32, #tpu.memory_space<vmem>>, vector<2x256xf32>
      %434 = vector.broadcast %65 : f32 to vector<2x256xf32>
      %435 = arith.mulf %433, %434 : vector<2x256xf32>
      %436 = arith.addf %428, %435 : vector<2x256xf32>
      %c0_193 = arith.constant 0 : index
      %c84_194 = arith.constant 84 : index
      %437 = vector.load %arg9[%c0_193, %c84_194] : memref<2x358xf32, #tpu.memory_space<vmem>>, vector<2x256xf32>
      %438 = vector.broadcast %114 : f32 to vector<2x256xf32>
      %439 = arith.mulf %437, %438 : vector<2x256xf32>
      %440 = arith.addf %432, %439 : vector<2x256xf32>
      %c0_195 = arith.constant 0 : index
      %c100 = arith.constant 100 : index
      %441 = vector.load %arg8[%c0_195, %c100] : memref<2x358xf32, #tpu.memory_space<vmem>>, vector<2x256xf32>
      %442 = vector.broadcast %72 : f32 to vector<2x256xf32>
      %443 = arith.mulf %441, %442 : vector<2x256xf32>
      %444 = arith.addf %436, %443 : vector<2x256xf32>
      %c0_196 = arith.constant 0 : index
      %c100_197 = arith.constant 100 : index
      %445 = vector.load %arg9[%c0_196, %c100_197] : memref<2x358xf32, #tpu.memory_space<vmem>>, vector<2x256xf32>
      %446 = vector.broadcast %121 : f32 to vector<2x256xf32>
      %447 = arith.mulf %445, %446 : vector<2x256xf32>
      %448 = arith.addf %440, %447 : vector<2x256xf32>
      %449 = arith.addf %444, %448 : vector<2x256xf32>
      %450 = vector.broadcast %390 : vector<1x256xf32> to vector<2x256xf32>
      %451 = arith.mulf %450, %449 : vector<2x256xf32>
      %452 = arith.addf %200, %451 : vector<2x256xf32>
      %c5_198 = arith.constant 5 : index
      %c0_199 = arith.constant 0 : index
      %453 = vector.load %arg3[%c5_198, %c0_199] : memref<7x256xf32, #tpu.memory_space<vmem>>, vector<1x256xf32>
      %cst_200 = arith.constant 0.000000e+00 : f32
      %454 = vector.broadcast %cst_200 : f32 to vector<2x256xf32>
      %cst_201 = arith.constant 0.000000e+00 : f32
      %455 = vector.broadcast %cst_201 : f32 to vector<2x256xf32>
      %c0_202 = arith.constant 0 : index
      %c5_203 = arith.constant 5 : index
      %456 = vector.load %arg8[%c0_202, %c5_203] : memref<2x358xf32, #tpu.memory_space<vmem>>, vector<2x256xf32>
      %457 = vector.broadcast %31 : f32 to vector<2x256xf32>
      %458 = arith.mulf %456, %457 : vector<2x256xf32>
      %459 = arith.addf %454, %458 : vector<2x256xf32>
      %c0_204 = arith.constant 0 : index
      %c5_205 = arith.constant 5 : index
      %460 = vector.load %arg9[%c0_204, %c5_205] : memref<2x358xf32, #tpu.memory_space<vmem>>, vector<2x256xf32>
      %461 = vector.broadcast %80 : f32 to vector<2x256xf32>
      %462 = arith.mulf %460, %461 : vector<2x256xf32>
      %463 = arith.addf %455, %462 : vector<2x256xf32>
      %c0_206 = arith.constant 0 : index
      %c21_207 = arith.constant 21 : index
      %464 = vector.load %arg8[%c0_206, %c21_207] : memref<2x358xf32, #tpu.memory_space<vmem>>, vector<2x256xf32>
      %465 = vector.broadcast %38 : f32 to vector<2x256xf32>
      %466 = arith.mulf %464, %465 : vector<2x256xf32>
      %467 = arith.addf %459, %466 : vector<2x256xf32>
      %c0_208 = arith.constant 0 : index
      %c21_209 = arith.constant 21 : index
      %468 = vector.load %arg9[%c0_208, %c21_209] : memref<2x358xf32, #tpu.memory_space<vmem>>, vector<2x256xf32>
      %469 = vector.broadcast %87 : f32 to vector<2x256xf32>
      %470 = arith.mulf %468, %469 : vector<2x256xf32>
      %471 = arith.addf %463, %470 : vector<2x256xf32>
      %c0_210 = arith.constant 0 : index
      %c37_211 = arith.constant 37 : index
      %472 = vector.load %arg8[%c0_210, %c37_211] : memref<2x358xf32, #tpu.memory_space<vmem>>, vector<2x256xf32>
      %473 = vector.broadcast %45 : f32 to vector<2x256xf32>
      %474 = arith.mulf %472, %473 : vector<2x256xf32>
      %475 = arith.addf %467, %474 : vector<2x256xf32>
      %c0_212 = arith.constant 0 : index
      %c37_213 = arith.constant 37 : index
      %476 = vector.load %arg9[%c0_212, %c37_213] : memref<2x358xf32, #tpu.memory_space<vmem>>, vector<2x256xf32>
      %477 = vector.broadcast %94 : f32 to vector<2x256xf32>
      %478 = arith.mulf %476, %477 : vector<2x256xf32>
      %479 = arith.addf %471, %478 : vector<2x256xf32>
      %c0_214 = arith.constant 0 : index
      %c53_215 = arith.constant 53 : index
      %480 = vector.load %arg8[%c0_214, %c53_215] : memref<2x358xf32, #tpu.memory_space<vmem>>, vector<2x256xf32>
      %481 = vector.broadcast %52 : f32 to vector<2x256xf32>
      %482 = arith.mulf %480, %481 : vector<2x256xf32>
      %483 = arith.addf %475, %482 : vector<2x256xf32>
      %c0_216 = arith.constant 0 : index
      %c53_217 = arith.constant 53 : index
      %484 = vector.load %arg9[%c0_216, %c53_217] : memref<2x358xf32, #tpu.memory_space<vmem>>, vector<2x256xf32>
      %485 = vector.broadcast %101 : f32 to vector<2x256xf32>
      %486 = arith.mulf %484, %485 : vector<2x256xf32>
      %487 = arith.addf %479, %486 : vector<2x256xf32>
      %c0_218 = arith.constant 0 : index
      %c69_219 = arith.constant 69 : index
      %488 = vector.load %arg8[%c0_218, %c69_219] : memref<2x358xf32, #tpu.memory_space<vmem>>, vector<2x256xf32>
      %489 = vector.broadcast %59 : f32 to vector<2x256xf32>
      %490 = arith.mulf %488, %489 : vector<2x256xf32>
      %491 = arith.addf %483, %490 : vector<2x256xf32>
      %c0_220 = arith.constant 0 : index
      %c69_221 = arith.constant 69 : index
      %492 = vector.load %arg9[%c0_220, %c69_221] : memref<2x358xf32, #tpu.memory_space<vmem>>, vector<2x256xf32>
      %493 = vector.broadcast %108 : f32 to vector<2x256xf32>
      %494 = arith.mulf %492, %493 : vector<2x256xf32>
      %495 = arith.addf %487, %494 : vector<2x256xf32>
      %c0_222 = arith.constant 0 : index
      %c85_223 = arith.constant 85 : index
      %496 = vector.load %arg8[%c0_222, %c85_223] : memref<2x358xf32, #tpu.memory_space<vmem>>, vector<2x256xf32>
      %497 = vector.broadcast %66 : f32 to vector<2x256xf32>
      %498 = arith.mulf %496, %497 : vector<2x256xf32>
      %499 = arith.addf %491, %498 : vector<2x256xf32>
      %c0_224 = arith.constant 0 : index
      %c85_225 = arith.constant 85 : index
      %500 = vector.load %arg9[%c0_224, %c85_225] : memref<2x358xf32, #tpu.memory_space<vmem>>, vector<2x256xf32>
      %501 = vector.broadcast %115 : f32 to vector<2x256xf32>
      %502 = arith.mulf %500, %501 : vector<2x256xf32>
      %503 = arith.addf %495, %502 : vector<2x256xf32>
      %c0_226 = arith.constant 0 : index
      %c101 = arith.constant 101 : index
      %504 = vector.load %arg8[%c0_226, %c101] : memref<2x358xf32, #tpu.memory_space<vmem>>, vector<2x256xf32>
      %505 = vector.broadcast %73 : f32 to vector<2x256xf32>
      %506 = arith.mulf %504, %505 : vector<2x256xf32>
      %507 = arith.addf %499, %506 : vector<2x256xf32>
      %c0_227 = arith.constant 0 : index
      %c101_228 = arith.constant 101 : index
      %508 = vector.load %arg9[%c0_227, %c101_228] : memref<2x358xf32, #tpu.memory_space<vmem>>, vector<2x256xf32>
      %509 = vector.broadcast %122 : f32 to vector<2x256xf32>
      %510 = arith.mulf %508, %509 : vector<2x256xf32>
      %511 = arith.addf %503, %510 : vector<2x256xf32>
      %512 = arith.addf %507, %511 : vector<2x256xf32>
      %513 = vector.broadcast %453 : vector<1x256xf32> to vector<2x256xf32>
      %514 = arith.mulf %513, %512 : vector<2x256xf32>
      %515 = arith.addf %263, %514 : vector<2x256xf32>
      %c6_229 = arith.constant 6 : index
      %c0_230 = arith.constant 0 : index
      %516 = vector.load %arg3[%c6_229, %c0_230] : memref<7x256xf32, #tpu.memory_space<vmem>>, vector<1x256xf32>
      %cst_231 = arith.constant 0.000000e+00 : f32
      %517 = vector.broadcast %cst_231 : f32 to vector<2x256xf32>
      %cst_232 = arith.constant 0.000000e+00 : f32
      %518 = vector.broadcast %cst_232 : f32 to vector<2x256xf32>
      %c0_233 = arith.constant 0 : index
      %c6_234 = arith.constant 6 : index
      %519 = vector.load %arg8[%c0_233, %c6_234] : memref<2x358xf32, #tpu.memory_space<vmem>>, vector<2x256xf32>
      %520 = vector.broadcast %32 : f32 to vector<2x256xf32>
      %521 = arith.mulf %519, %520 : vector<2x256xf32>
      %522 = arith.addf %517, %521 : vector<2x256xf32>
      %c0_235 = arith.constant 0 : index
      %c6_236 = arith.constant 6 : index
      %523 = vector.load %arg9[%c0_235, %c6_236] : memref<2x358xf32, #tpu.memory_space<vmem>>, vector<2x256xf32>
      %524 = vector.broadcast %81 : f32 to vector<2x256xf32>
      %525 = arith.mulf %523, %524 : vector<2x256xf32>
      %526 = arith.addf %518, %525 : vector<2x256xf32>
      %c0_237 = arith.constant 0 : index
      %c22_238 = arith.constant 22 : index
      %527 = vector.load %arg8[%c0_237, %c22_238] : memref<2x358xf32, #tpu.memory_space<vmem>>, vector<2x256xf32>
      %528 = vector.broadcast %39 : f32 to vector<2x256xf32>
      %529 = arith.mulf %527, %528 : vector<2x256xf32>
      %530 = arith.addf %522, %529 : vector<2x256xf32>
      %c0_239 = arith.constant 0 : index
      %c22_240 = arith.constant 22 : index
      %531 = vector.load %arg9[%c0_239, %c22_240] : memref<2x358xf32, #tpu.memory_space<vmem>>, vector<2x256xf32>
      %532 = vector.broadcast %88 : f32 to vector<2x256xf32>
      %533 = arith.mulf %531, %532 : vector<2x256xf32>
      %534 = arith.addf %526, %533 : vector<2x256xf32>
      %c0_241 = arith.constant 0 : index
      %c38_242 = arith.constant 38 : index
      %535 = vector.load %arg8[%c0_241, %c38_242] : memref<2x358xf32, #tpu.memory_space<vmem>>, vector<2x256xf32>
      %536 = vector.broadcast %46 : f32 to vector<2x256xf32>
      %537 = arith.mulf %535, %536 : vector<2x256xf32>
      %538 = arith.addf %530, %537 : vector<2x256xf32>
      %c0_243 = arith.constant 0 : index
      %c38_244 = arith.constant 38 : index
      %539 = vector.load %arg9[%c0_243, %c38_244] : memref<2x358xf32, #tpu.memory_space<vmem>>, vector<2x256xf32>
      %540 = vector.broadcast %95 : f32 to vector<2x256xf32>
      %541 = arith.mulf %539, %540 : vector<2x256xf32>
      %542 = arith.addf %534, %541 : vector<2x256xf32>
      %c0_245 = arith.constant 0 : index
      %c54_246 = arith.constant 54 : index
      %543 = vector.load %arg8[%c0_245, %c54_246] : memref<2x358xf32, #tpu.memory_space<vmem>>, vector<2x256xf32>
      %544 = vector.broadcast %53 : f32 to vector<2x256xf32>
      %545 = arith.mulf %543, %544 : vector<2x256xf32>
      %546 = arith.addf %538, %545 : vector<2x256xf32>
      %c0_247 = arith.constant 0 : index
      %c54_248 = arith.constant 54 : index
      %547 = vector.load %arg9[%c0_247, %c54_248] : memref<2x358xf32, #tpu.memory_space<vmem>>, vector<2x256xf32>
      %548 = vector.broadcast %102 : f32 to vector<2x256xf32>
      %549 = arith.mulf %547, %548 : vector<2x256xf32>
      %550 = arith.addf %542, %549 : vector<2x256xf32>
      %c0_249 = arith.constant 0 : index
      %c70_250 = arith.constant 70 : index
      %551 = vector.load %arg8[%c0_249, %c70_250] : memref<2x358xf32, #tpu.memory_space<vmem>>, vector<2x256xf32>
      %552 = vector.broadcast %60 : f32 to vector<2x256xf32>
      %553 = arith.mulf %551, %552 : vector<2x256xf32>
      %554 = arith.addf %546, %553 : vector<2x256xf32>
      %c0_251 = arith.constant 0 : index
      %c70_252 = arith.constant 70 : index
      %555 = vector.load %arg9[%c0_251, %c70_252] : memref<2x358xf32, #tpu.memory_space<vmem>>, vector<2x256xf32>
      %556 = vector.broadcast %109 : f32 to vector<2x256xf32>
      %557 = arith.mulf %555, %556 : vector<2x256xf32>
      %558 = arith.addf %550, %557 : vector<2x256xf32>
      %c0_253 = arith.constant 0 : index
      %c86_254 = arith.constant 86 : index
      %559 = vector.load %arg8[%c0_253, %c86_254] : memref<2x358xf32, #tpu.memory_space<vmem>>, vector<2x256xf32>
      %560 = vector.broadcast %67 : f32 to vector<2x256xf32>
      %561 = arith.mulf %559, %560 : vector<2x256xf32>
      %562 = arith.addf %554, %561 : vector<2x256xf32>
      %c0_255 = arith.constant 0 : index
      %c86_256 = arith.constant 86 : index
      %563 = vector.load %arg9[%c0_255, %c86_256] : memref<2x358xf32, #tpu.memory_space<vmem>>, vector<2x256xf32>
      %564 = vector.broadcast %116 : f32 to vector<2x256xf32>
      %565 = arith.mulf %563, %564 : vector<2x256xf32>
      %566 = arith.addf %558, %565 : vector<2x256xf32>
      %c0_257 = arith.constant 0 : index
      %c102 = arith.constant 102 : index
      %567 = vector.load %arg8[%c0_257, %c102] : memref<2x358xf32, #tpu.memory_space<vmem>>, vector<2x256xf32>
      %568 = vector.broadcast %74 : f32 to vector<2x256xf32>
      %569 = arith.mulf %567, %568 : vector<2x256xf32>
      %570 = arith.addf %562, %569 : vector<2x256xf32>
      %c0_258 = arith.constant 0 : index
      %c102_259 = arith.constant 102 : index
      %571 = vector.load %arg9[%c0_258, %c102_259] : memref<2x358xf32, #tpu.memory_space<vmem>>, vector<2x256xf32>
      %572 = vector.broadcast %123 : f32 to vector<2x256xf32>
      %573 = arith.mulf %571, %572 : vector<2x256xf32>
      %574 = arith.addf %566, %573 : vector<2x256xf32>
      %575 = arith.addf %570, %574 : vector<2x256xf32>
      %576 = vector.broadcast %516 : vector<1x256xf32> to vector<2x256xf32>
      %577 = arith.mulf %576, %575 : vector<2x256xf32>
      %578 = arith.addf %326, %577 : vector<2x256xf32>
      %579 = arith.addf %452, %515 : vector<2x256xf32>
      %580 = arith.addf %578, %389 : vector<2x256xf32>
      %581 = arith.addf %579, %580 : vector<2x256xf32>
      %582 = arith.negf %581 : vector<2x256xf32>
      %583 = math.exp %582 : vector<2x256xf32>
      %cst_260 = arith.constant 1.000000e+00 : f32
      %584 = vector.broadcast %cst_260 : f32 to vector<2x256xf32>
      %585 = arith.addf %584, %583 : vector<2x256xf32>
      %586 = arith.divf %584, %585 : vector<2x256xf32>
      %c0_261 = arith.constant 0 : index
      %c0_262 = arith.constant 0 : index
      %587 = vector.load %arg5[%c0_261, %c0_262] : memref<2x256xf32, #tpu.memory_space<vmem>>, vector<2x256xf32>
      tpu.vector_store %arg5[%c0_261, %c0_262], %586 {strides = array<i32>} : memref<2x256xf32, #tpu.memory_space<vmem>>, vector<2x256xf32>,
    } else {
    }
    return
  }
  func.func @transform_0(%arg0: i32, %arg1: i32) -> (i32, i32, i32) {
    %c0_i32 = arith.constant 0 : i32
    %c0_i32_0 = arith.constant 0 : i32
    return %arg0, %arg1, %c0_i32 : i32, i32, i32
  }
  func.func @transform_1(%arg0: i32, %arg1: i32) -> (i32, i32) {
    %c0_i32 = arith.constant 0 : i32
    %c0_i32_0 = arith.constant 0 : i32
    %c0_i32_1 = arith.constant 0 : i32
    return %c0_i32, %c0_i32_0 : i32, i32
  }
  func.func @transform_2(%arg0: i32, %arg1: i32) -> i32 {
    %c0_i32 = arith.constant 0 : i32
    %c0_i32_0 = arith.constant 0 : i32
    return %c0_i32 : i32
  }
  func.func @transform_3(%arg0: i32, %arg1: i32) -> (i32, i32) {
    %c0_i32 = arith.constant 0 : i32
    %c0_i32_0 = arith.constant 0 : i32
    return %arg0, %c0_i32 : i32, i32
  }
}

</mosaic_0001>

<bundles_post_ra>
// kernel: tpu_custom_call.1
= control target key start
LH: loop header
LB: loop body
LE: loop exit
PB: predicated region body
PF: predicated region fallthrough
CT: control target
= control target key end

     0   :  { %8 = vsyncpa [#allocation7], 0  ;;  %s2106_s0 = inlined_call_operand.hbm [shape: f32[2,4,256], index: 0, kind: input, shape index: {}]   ;;  %s2107_s1 = inlined_call_operand.hbm [shape: f32[7,256], index: 1, kind: input, shape index: {}]   ;;  %s2108_s2 = inlined_call_operand.vmem [shape: f32[98], index: 2, kind: input, shape index: {}]   ;;  %s2109_s3 = inlined_call_operand.hbm [shape: f32[2,256], index: 3, kind: output, shape index: {}]  }
   0x1   :  { %9 = vsyncpa [#allocation11], 0 }
   0x2   :  { %10 = vsyncpa [#allocation9], 0 }
   0x3   :  { %11 = vsyncpa [#allocation8], 0  ;;  %s16_s14 = sshll.u32 %s2106_s0, 4  ;;  %s1535_s15 = smov [#allocation6]   ;;  %s17_s14 = int_to_ptr.hbm [resolvable:$true] %s16_s14 }
   0x4   :  { %s18_s16 = sshll.u32 %s1535_s15, 4  ;;  %s30_s19 = sshll.u32 %s2107_s1, 4  ;;  %s19_s16 = int_to_ptr.vmem [resolvable:$true] %s18_s16  ;;  %s31_s19 = int_to_ptr.hbm [resolvable:$true] %s30_s19 }
   0x5   :  { %s1536_s20 = smov 128   ;;  %s1537_s21 = smov 8  }
   0x6   :  { %24 = dma.hbm_to_vmem [thread:$0]  %s17_s14, 256, %s19_s16, [#allocation7], %s1536_s20, %s1536_s20, %s1537_s21  }
   0x7   :  { %s1538_s22 = smov [#allocation10]   ;;  %s41_s26 = sshll.u32 %s2108_s2, 4  ;;  %s42_s26 = int_to_ptr.vmem [resolvable:$true] %s41_s26 }
   0x8   :  { %s32_s23 = sshll.u32 %s1538_s22, 4  ;;  %s1539_s0 = smov [#allocation12]   ;;  %s33_s23 = int_to_ptr.vmem [resolvable:$true] %s32_s23 }
   0x9   :  { %35 = dma.hbm_to_vmem [thread:$0]  %s31_s19, 256, %s33_s23, [#allocation11]  }
   0xa   :  { %44 = dma.vmem_to_smem %s42_s26, 16, %s1539_s0, [#allocation9]  }
   0xb   :  { %1527 = dma.done.wait [#allocation7], 256  }
   0xc   :  { %1528 = vsyncadd [#allocation7], 4294967040 }
   0xd   :  { %1529 = dma.done.wait [#allocation11], 256  }
   0xe   :  { %1530 = vsyncadd [#allocation11], 4294967040 }
   0xf   :  { %1531 = dma.done.wait [#allocation9], 16  }
  0x10   :  { %1532 = vsyncadd [#allocation9], 4294967280 }
  0x11   :  { %57 = sfence }
  0x12   :  { %v58_v0 = vld [vmem:[#allocation6] ss:$4 sm:$0x3]  ;;  %v60_v1 = vld [vmem:[#allocation6 + $0x8] ss:$4 sm:$0x3] }
  0x13   :  { %v62_v2 = vld [vmem:[#allocation6 + $0x1] ss:$4 sm:$0x3]  ;;  %v64_v3 = vld [vmem:[#allocation6 + $0x9] ss:$4 sm:$0x3] }
  0x14   :  { %v66_v4 = vld [vmem:[#allocation6 + $0x2] ss:$4 sm:$0x3]  ;;  %v68_v5 = vld [vmem:[#allocation6 + $0xa] ss:$4 sm:$0x3]  ;;  %v73_v6 = vadd.f32 %v62_v2, %v58_v0  ;;  %v74_v7 = vadd.f32 %v64_v3, %v60_v1  ;;  %v77_v16 = vmax.f32 %v58_v0, %v62_v2  ;;  %v78_v18 = vmax.f32 %v60_v1, %v64_v3 }
  0x15   :  { %v70_v8 = vld [vmem:[#allocation6 + $0x3] ss:$4 sm:$0x3]  ;;  %v72_v9 = vld [vmem:[#allocation6 + $0xb] ss:$4 sm:$0x3] }
  0x16   :  { %v75_v10 = vadd.f32 %v70_v8, %v66_v4  ;;  %v76_v11 = vadd.f32 %v72_v9, %v68_v5  ;;  %v1540_v12 = vmov 0.0   ;;  %vm212_vm0 = vcmask 1041408   ;;  %s1542_s1 = smov 51   ;;  %s1335_s2 = sld [smem:[#allocation12 + $0x15]] }
  0x17   :  { %89 = vst [vmem:[#allocation2] sm:$0xf] %v1540_v12  ;;  %vm213_vm1 = vcmask 1043458   ;;  %v1541_v15 = vmov -inf   ;;  %vm215_vm3 = vcmask 832516   ;;  %v79_v17 = vmax.f32 %v66_v4, %v70_v8  ;;  %s1328_s27 = sld [smem:[#allocation12 + $0xe]] }
  0x18   :  { %v81_v13 = vadd.f32 %v75_v10, %v73_v6  ;;  %v82_v14 = vadd.f32 %v76_v11, %v74_v7  ;;  %90 = vst [vmem:[#allocation3] sm:$0xf] %v1541_v15  ;;  %vm214_vm2 = vmor %vm213_vm1, %vm212_vm0  ;;  %v80_v19 = vmax.f32 %v68_v5, %v72_v9  ;;  %vm228_vm5 = vcmask 1041816   ;;  %s1321_s28 = sld [smem:[#allocation12 + $0x7]]  ;;  %s1543_s5 = smov 80  }
  0x19   :  { %vm216_vm4 = vmor %vm215_vm3, %vm214_vm2  ;;  %v83_v20 = vmax.f32 %v77_v16, %v79_v17  ;;  %vm230_vm7 = vcmask 414724   ;;  %vm225_vm8 = vcmask 416768   ;;  %s1356_s29 = sld [smem:[#allocation12 + $0x2a]]  ;;  %s1544_s6 = smov 96   ;;  %vm257_vm10 = vcmask 916480  }
  0x1a   :  { %94 = vst [vmem:[#allocation1] ss:$2 sm:$0xff] %v81_v13  ;;  %v84_v22 = vmax.f32 %v78_v18, %v80_v19  ;;  %vm229_vm6 = vmor %vm213_vm1, %vm228_vm5  ;;  %s1342_s30 = sld [smem:[#allocation12 + $0x1c]]  ;;  %s1545_s7 = smov 112   ;;  %vm277_vm11 = vcmask 785408   ;;  %vm296_vm12 = vcmask 654336  }
  0x1b   :  { %96 = vst [vmem:[#allocation1 + $0x1] ss:$2 sm:$0xff] %v82_v14  ;;  %vm1588_vm9 = vmor %vm230_vm7, %vm229_vm6  ;;  %s1349_s4 = sld [smem:[#allocation12 + $0x23]]  ;;  %s1546_s11 = smov 32   ;;  %vm315_vm13 = vcmask 523264   ;;  %vm334_vm14 = vcmask 392192  }
  0x1c   :  { %217 = vst.msk [vmem:[#allocation4] sm:$0x3f] %vm216_vm4, %v1540_v12  ;;  %v290_v35 = vstv %s1335_s2  ;;  %s1336_s8 = sld [smem:[#allocation12 + $0x16]]  ;;  %s1547_s12 = smov 64   ;;  %vm353_vm15 = vcmask 261120   ;;  %vm1093_vm1 = vcmask 1006592  }
  0x1d   :  { %218 = vst.msk [vmem:[#allocation5] sm:$0x3f] %vm216_vm4, %v1540_v12  ;;  %v271_v36 = vstv %s1328_s27  ;;  %s1322_s9 = sld [smem:[#allocation12 + $0x8]]  ;;  %s1548_s13 = smov 48   ;;  %vm517_vm2 = vcmask 1039360   ;;  %vm949_vm3 = vcmask 1014784  }
  0x1e   :  { %v91_v21 = vld [vmem:[#allocation2] sm:$0xf]  ;;  %v251_v37 = vstv %s1321_s28  ;;  %s1329_s10 = sld [smem:[#allocation12 + $0xf]]  ;;  %vm661_vm4 = vcmask 1031168   ;;  %vm805_vm5 = vcmask 1022976   ;;  %vm1237_vm6 = vcmask 998400  }
  0x1f   :  { %v101_v25 = vld [vmem:[#allocation3] sm:$0xf]  ;;  %v347_v42 = vstv %s1356_s29  ;;  %s1357_s14 = sld [smem:[#allocation12 + $0x2b]] }
  0x20   :  { %v309_v43 = vstv %s1342_s30  ;;  %s1343_s15 = sld [smem:[#allocation12 + $0x1d]] }
  0x21   :  { %v328_v44 = vstv %s1349_s4  ;;  %s1350_s16 = sld [smem:[#allocation12 + $0x24]] }
  0x22   :  { %v97_v23 = vld [vmem:[#allocation1] sm:$0xff]  ;;  %v428_v49 = vstv %s1336_s8  ;;  %s1337_s17 = sld [smem:[#allocation12 + $0x17]] }
  0x23   :  { %v99_v24 = vadd.f32 %v97_v23, %v91_v21  ;;  %104 = vst [vmem:[#allocation1] ss:$2 sm:$0xff] %v83_v20  ;;  %v392_v50 = vstv %s1322_s9  ;;  %s1323_s18 = sld [smem:[#allocation12 + $0x9]] }
  0x24   :  { %106 = vst [vmem:[#allocation1 + $0x1] ss:$2 sm:$0xff] %v84_v22  ;;  %v410_v51 = vstv %s1329_s10  ;;  %s1330_s19 = sld [smem:[#allocation12 + $0x10]] }
  0x25   :  { %100 = vst [vmem:[#allocation2] sm:$0xf] %v99_v24  ;;  %v482_v55 = vstv %s1357_s14  ;;  %s1358_s20 = sld [smem:[#allocation12 + $0x2c]] }
  0x26   :  { %v446_v56 = vstv %s1343_s15  ;;  %s1344_s21 = sld [smem:[#allocation12 + $0x1e]] }
  0x27   :  { %v464_v57 = vstv %s1350_s16  ;;  %s1351_s22 = sld [smem:[#allocation12 + $0x25]] }
  0x28   :  { %v572_v0 = vstv %s1337_s17  ;;  %s1338_s23 = sld [smem:[#allocation12 + $0x18]] }
  0x29   :  { %v536_v1 = vstv %s1323_s18  ;;  %s1324_s24 = sld [smem:[#allocation12 + $0xa]] }
  0x2a   :  { %v554_v2 = vstv %s1330_s19  ;;  %s1331_s25 = sld [smem:[#allocation12 + $0x11]] }
  0x2b   :  { %v107_v26 = vld [vmem:[#allocation1] sm:$0xff]  ;;  %v626_v7 = vstv %s1358_s20  ;;  %s1325_s26 = sld [smem:[#allocation12 + $0xb]] }
  0x2c   :  { %v219_v27 = vld [vmem:[#allocation2] sm:$0xf]  ;;  %v109_v28 = vmax.f32 %v101_v25, %v107_v26  ;;  %v590_v8 = vstv %s1344_s21  ;;  %s1345_s0 = sld [smem:[#allocation12 + $0x1f]] }
  0x2d   :  { %v220_v29 = vmul.f32 0.25, %v219_v27  ;;  %v608_v9 = vstv %s1351_s22  ;;  %s1339_s2 = sld [smem:[#allocation12 + $0x19]] }
  0x2e   :  { %110 = vst [vmem:[#allocation3] sm:$0xf] %v109_v28  ;;  %v716_v14 = vstv %s1338_s23  ;;  %s1359_s27 = sld [smem:[#allocation12 + $0x2d]] }
  0x2f   :  { %222 = vrot.lane.b32.xlu0 %v220_v29, %s1542_s1  ;;  %v680_v15 = vstv %s1324_s24  ;;  %s1332_s28 = sld [smem:[#allocation12 + $0x12]] }
  0x30   :  { %v698_v16 = vstv %s1331_s25  ;;  %s1391_s29 = sld [smem:[#allocation12 + $0x4d]] }
  0x31   :  { %v824_v21 = vstv %s1325_s26  ;;  %s1346_s30 = sld [smem:[#allocation12 + $0x20]] }
  0x32   :  { %v734_v22 = vstv %s1345_s0  ;;  %s1353_s4 = sld [smem:[#allocation12 + $0x27]] }
  0x33   :  { %v860_v27 = vstv %s1339_s2  ;;  %s1371_s8 = sld [smem:[#allocation12 + $0x39]] }
  0x34   :  { %v770_v28 = vstv %s1359_s27  ;;  %s1377_s9 = sld [smem:[#allocation12 + $0x3f]] }
  0x35   :  { %v233_v30 = vld [vmem:[#allocation3] sm:$0xf]  ;;  %v842_v29 = vstv %s1332_s28  ;;  %s1370_s10 = sld [smem:[#allocation12 + $0x38]] }
  0x36   :  { %s1392_s14 = sld [smem:[#allocation12 + $0x4e]] }
  0x37   :  { %235 = vrot.lane.b32.xlu0 %v233_v30, %s1542_s1  ;;  %s1352_s1 = sld [smem:[#allocation12 + $0x26]] }
  0x38   :  { %s1398_s15 = sld [smem:[#allocation12 + $0x54]] }
  0x39   :  { %s1384_s16 = sld [smem:[#allocation12 + $0x46]] }
  0x3a   :  { %s1372_s17 = sld [smem:[#allocation12 + $0x3a]] }
  0x3b   :  { %s1378_s18 = sld [smem:[#allocation12 + $0x40]] }
  0x3c   :  { %s1405_s19 = sld [smem:[#allocation12 + $0x5b]] }
  0x3d   :  { %v752_v23 = vstv %s1352_s1  ;;  %s1393_s20 = sld [smem:[#allocation12 + $0x4f]] }
  0x3e   :  { %s1399_s21 = sld [smem:[#allocation12 + $0x55]] }
  0x3f   :  { %s1385_s22 = sld [smem:[#allocation12 + $0x47]] }
  0x40   :  { %s1315_s23 = sld [smem:[#allocation12 + $0x1]] }
  0x41   :  { %s1373_s24 = sld [smem:[#allocation12 + $0x3b]] }
  0x42   :  { %s1379_s25 = sld [smem:[#allocation12 + $0x41]] }
  0x43   :  { %s1406_s26 = sld [smem:[#allocation12 + $0x5c]] }
  0x44   :  { %s1686_s0 = sld [smem:[#allocation12]] }
  0x45   :  { %s1688_s1 = sld [smem:[#allocation12 + $0x50]] }
  0x46   :  { %s1692_s2 = sld [smem:[#allocation12 + $0x56]] }
  0x47   :  { %s1695_s27 = sld [smem:[#allocation12 + $0x48]] }
  0x48   :  { %s1703_s28 = sld [smem:[#allocation12 + $0x2]] }
  0xa1   :  { %v223_v31 = vpop.permute.xlu0 %222 }
  0xa2   :  { %v224_v33 = vrot.slane %v223_v31, 6 }
  0xa4   :  { %v226_v34 = vsel %vm225_vm8, %v224_v33, %v223_v31 }
  0xa5   :  { %232 = vst.msk [vmem:[#allocation4] sm:$0x3f] %vm1588_vm9, %v226_v34  ;;  %v319_v34 = vstv %s1391_s29  ;;  %s1711_s29 = sld [smem:[#allocation12 + $0x5e]] }
  0xa9   :  { %v236_v61 = vpop.permute.xlu0 %235 }
  0xaa   :  { %v237_v62 = vrot.slane %v236_v61, 6 }
  0xac   :  { %v250_v38 = vld [vmem:[#allocation4] sm:$0x3f]  ;;  %v238_v3 = vsel %vm225_vm8, %v237_v62, %v236_v61 }
  0xad   :  { %v291_v39 = vmul.f32 %v290_v35, %v250_v38  ;;  %v272_v40 = vmul.f32 %v271_v36, %v250_v38  ;;  %v252_v41 = vmul.f32 %v251_v37, %v250_v38  ;;  %v348_v45 = vmul.f32 %v347_v42, %v250_v38  ;;  %v1601_v48 = vld [vmem:[#allocation4] sm:$0x3f]  ;;  %240 = vst.msk [vmem:[#allocation5] sm:$0x3f] %vm1588_vm9, %v238_v3 }
  0xae   :  { %v310_v46 = vmul.f32 %v309_v43, %v250_v38  ;;  %v329_v47 = vmul.f32 %v328_v44, %v250_v38  ;;  %v429_v52 = vmul.f32 %v428_v49, %v1601_v48  ;;  %v393_v53 = vmul.f32 %v392_v50, %v1601_v48  ;;  %v1615_v63 = vld [vmem:[#allocation4] sm:$0x3f] }
  0xaf   :  { %293 = vrot.lane.b32.xlu0 %v291_v39, %s1543_s5  ;;  %274 = vrot.lane.b32.xlu2 %v272_v40, %s1544_s6  ;;  %v411_v54 = vmul.f32 %v410_v51, %v1601_v48  ;;  %v483_v58 = vmul.f32 %v482_v55, %v1601_v48  ;;  %v447_v59 = vmul.f32 %v446_v56, %v1601_v48  ;;  %v1632_v13 = vld [vmem:[#allocation4] sm:$0x3f]  ;;  %v878_v35 = vstv %s1346_s30  ;;  %s1715_s30 = sld [smem:[#allocation12 + $0x42]] }
  0xb0   :  { %254 = vrot.lane.b32.xlu1 %v252_v41, %s1545_s7  ;;  %v465_v60 = vmul.f32 %v464_v57, %v1601_v48  ;;  %v573_v4 = vmul.f32 %v572_v0, %v1615_v63  ;;  %v537_v5 = vmul.f32 %v536_v1, %v1615_v63  ;;  %v555_v6 = vmul.f32 %v554_v2, %v1615_v63  ;;  %v1640_v20 = vld [vmem:[#allocation4] sm:$0x3f] }
  0xb1   :  { %v627_v10 = vmul.f32 %v626_v7, %v1615_v63  ;;  %v591_v11 = vmul.f32 %v590_v8, %v1615_v63  ;;  %v609_v12 = vmul.f32 %v608_v9, %v1615_v63  ;;  %v717_v17 = vmul.f32 %v716_v14, %v1632_v13 }
  0xb2   :  { %v681_v18 = vmul.f32 %v680_v15, %v1632_v13  ;;  %v699_v19 = vmul.f32 %v698_v16, %v1632_v13  ;;  %v825_v24 = vmul.f32 %v824_v21, %v1640_v20  ;;  %v735_v25 = vmul.f32 %v734_v22, %v1632_v13  ;;  %v242_v22 = vld [vmem:[#allocation4] sm:$0xf] }
  0xb3   :  { %v753_v26 = vmul.f32 %v752_v23, %v1632_v13  ;;  %v861_v30 = vmul.f32 %v860_v27, %v1640_v20  ;;  %v771_v31 = vmul.f32 %v770_v28, %v1632_v13  ;;  %v843_v32 = vmul.f32 %v842_v29, %v1640_v20 }
  0xb4   :  { %v261_v33 = vld [vmem:[#allocation5] sm:$0x3f]  ;;  %v896_v36 = vstv %s1353_s4  ;;  %v879_v38 = vmul.f32 %v878_v35, %v1640_v20  ;;  %v401_v41 = vstv %s1371_s8  ;;  %v281_v42 = vstv %s1377_s9  ;;  %s1719_s4 = sld [smem:[#allocation12 + $0x5d]] }
  0xb5   :  { %v320_v37 = vmul.f32 %v319_v34, %v261_v33  ;;  %v897_v39 = vmul.f32 %v896_v36, %v1640_v20  ;;  %v1659_v40 = vld [vmem:[#allocation5] sm:$0x3f]  ;;  %v262_v43 = vstv %s1370_s10  ;;  %v338_v49 = vstv %s1398_s15  ;;  %s1735_s8 = sld [smem:[#allocation12 + $0x51]] }
  0xb6   :  { %v402_v44 = vmul.f32 %v401_v41, %v1659_v40  ;;  %v300_v50 = vstv %s1384_s16  ;;  %v1671_v55 = vld [vmem:[#allocation5] sm:$0x3f]  ;;  %v545_v56 = vstv %s1372_s17  ;;  %v419_v57 = vstv %s1378_s18  ;;  %s1738_s9 = sld [smem:[#allocation12 + $0x57]] }
  0xb7   :  { %350 = vrot.lane.b32.xlu0 %v348_v45, %s1546_s11  ;;  %312 = vrot.lane.b32.xlu2 %v310_v46, %s1547_s12  ;;  %v282_v45 = vmul.f32 %v281_v42, %v261_v33  ;;  %v263_v46 = vmul.f32 %v262_v43, %v261_v33  ;;  %v599_v0 = vstv %s1393_s20  ;;  %v473_v1 = vstv %s1399_s21  ;;  %v1690_v9 = vld [vmem:[#allocation5] sm:$0x3f]  ;;  %s1743_s10 = sld [smem:[#allocation12 + $0x49]] }
  0xb8   :  { %331 = vrot.lane.b32.xlu1 %v329_v47, %s1548_s13  ;;  %v455_v47 = vstv %s1392_s14  ;;  %v437_v2 = vstv %s1385_s22  ;;  %v600_v3 = vmul.f32 %v599_v0, %v1671_v55  ;;  %v491_v14 = vstv %s1406_s26  ;;  %s1758_s14 = sld [smem:[#allocation12 + $0x3]] }
  0xb9   :  { %v456_v51 = vmul.f32 %v455_v47, %v1659_v40  ;;  %v243_v21 = vstv %s1686_s0  ;;  %v581_v29 = vstv %s1695_s27  ;;  %s1762_s15 = sld [smem:[#allocation12 + $0xc]] }
  0xba   :  { %v582_v36 = vmul.f32 %v581_v29, %v1671_v55  ;;  %s1768_s16 = sld [smem:[#allocation12 + $0x43]] }
  0xbb   :  { %s1771_s17 = sld [smem:[#allocation12 + $0x3c]] }
  0xbc   :  { %s1786_s18 = sld [smem:[#allocation12 + $0x5f]] }
  0xbd   :  { %s1388_s20 = sld [smem:[#allocation12 + $0x4a]] }
  0xbe   :  { %s1811_s21 = sld [smem:[#allocation12 + $0x1a]] }
  0xbf   :  { %431 = vrot.lane.b32.xlu0 %v429_v52, %s1543_s5  ;;  %395 = vrot.lane.b32.xlu2 %v393_v53, %s1545_s7  ;;  %v339_v52 = vmul.f32 %v338_v49, %v261_v33  ;;  %v301_v53 = vmul.f32 %v300_v50, %v261_v33  ;;  %s1815_s22 = sld [smem:[#allocation12 + $0x2e]] }
  0xc0   :  { %413 = vrot.lane.b32.xlu1 %v411_v54, %s1544_s6  ;;  %s1333_s26 = sld [smem:[#allocation12 + $0x13]] }
  0xc1   :  { %s1849_s0 = sld [smem:[#allocation12 + $0x4]] }
  0xc2   :  { %s1859_s27 = sld [smem:[#allocation12 + $0x4b]] }
  0xc7   :  { %485 = vrot.lane.b32.xlu0 %v483_v58, %s1546_s11  ;;  %449 = vrot.lane.b32.xlu2 %v447_v59, %s1547_s12  ;;  %v357_v58 = vstv %s1405_s19  ;;  %v546_v59 = vmul.f32 %v545_v56, %v1671_v55  ;;  %v635_v56 = vstv %s1719_s4  ;;  %s1792_s19 = sld [smem:[#allocation12 + $0x58]] }
  0xc8   :  { %467 = vrot.lane.b32.xlu1 %v465_v60, %s1548_s13  ;;  %v420_v60 = vmul.f32 %v419_v57, %v1659_v40  ;;  %v358_v61 = vmul.f32 %v357_v58, %v261_v33  ;;  %v636_v0 = vmul.f32 %v635_v56, %v1671_v55  ;;  %s1901_s4 = sld [smem:[#allocation12 + $0x1b]] }
  0xcf   :  { %575 = vrot.lane.b32.xlu0 %v573_v4, %s1543_s5  ;;  %539 = vrot.lane.b32.xlu2 %v537_v5, %s1545_s7  ;;  %v474_v4 = vmul.f32 %v473_v1, %v1659_v40  ;;  %v438_v5 = vmul.f32 %v437_v2, %v1659_v40 }
  0xd0   :  { %557 = vrot.lane.b32.xlu1 %v555_v6, %s1544_s6  ;;  %v385_v6 = vstv %s1315_s23  ;;  %s1375_s23 = sld [smem:[#allocation12 + $0x3d]] }
  0xd7   :  { %629 = vrot.lane.b32.xlu0 %v627_v10, %s1546_s11  ;;  %593 = vrot.lane.b32.xlu2 %v591_v11, %s1547_s12  ;;  %v689_v10 = vstv %s1373_s24  ;;  %v563_v11 = vstv %s1379_s25  ;;  %s1831_s24 = sld [smem:[#allocation12 + $0x52]] }
  0xd8   :  { %611 = vrot.lane.b32.xlu1 %v609_v12, %s1548_s13  ;;  %v386_v12 = vmul.f32 %v385_v6, %v1601_v48  ;;  %v1764_v6 = vld [vmem:[#allocation5] sm:$0x3f]  ;;  %s1835_s25 = sld [smem:[#allocation12 + $0x44]] }
  0xdf   :  { %719 = vrot.lane.b32.xlu0 %v717_v17, %s1543_s5  ;;  %683 = vrot.lane.b32.xlu2 %v681_v18, %s1545_s7  ;;  %v690_v17 = vmul.f32 %v689_v10, %v1690_v9  ;;  %v564_v18 = vmul.f32 %v563_v11, %v1671_v55 }
  0xe0   :  { %701 = vrot.lane.b32.xlu1 %v699_v19, %s1544_s6  ;;  %v492_v19 = vmul.f32 %v491_v14, %v1659_v40 }
  0xe7   :  { %827 = vrot.lane.b32.xlu0 %v825_v24, %s1545_s7  ;;  %737 = vrot.lane.b32.xlu2 %v735_v25, %s1547_s12  ;;  %v743_v25 = vstv %s1688_s1  ;;  %s1853_s1 = sld [smem:[#allocation12 + $0xd]] }
  0xe8   :  { %755 = vrot.lane.b32.xlu1 %v753_v26, %s1548_s13  ;;  %v617_v26 = vstv %s1692_s2  ;;  %v744_v33 = vmul.f32 %v743_v25, %v1690_v9  ;;  %s1857_s2 = sld [smem:[#allocation12 + $0x21]] }
  0xe9   :  { %v618_v34 = vmul.f32 %v617_v26, %v1671_v55 }
  0xef   :  { %863 = vrot.lane.b32.xlu0 %v861_v30, %s1543_s5  ;;  %773 = vrot.lane.b32.xlu2 %v771_v31, %s1546_s11  ;;  %v244_v30 = vmul.f32 %v243_v21, %v242_v22 }
  0xf0   :  { %845 = vrot.lane.b32.xlu1 %v843_v32, %s1544_s6 }
  0xf7   :  { %881 = vrot.lane.b32.xlu2 %v879_v38, %s1547_s12  ;;  %322 = vrot.lane.b32.xlu0 %v320_v37, %s1547_s12  ;;  %v529_v37 = vstv %s1703_s28  ;;  %s1876_s28 = sld [smem:[#allocation12 + $0x60]] }
  0xf8   :  { %899 = vrot.lane.b32.xlu1 %v897_v39, %s1548_s13  ;;  %v530_v43 = vmul.f32 %v529_v37, %v1615_v63 }
  0xff   :  { %404 = vrot.lane.b32.xlu0 %v402_v44, %s1545_s7  ;;  %284 = vrot.lane.b32.xlu2 %v282_v45, %s1544_s6 }
 0x100   :  { %265 = vrot.lane.b32.xlu1 %v263_v46, %s1545_s7  ;;  %v779_v46 = vstv %s1711_s29  ;;  %s1882_s29 = sld [smem:[#allocation12 + $0x59]] }
 0x107   :  { %458 = vrot.lane.b32.xlu0 %v456_v51, %s1547_s12  ;;  %341 = vrot.lane.b32.xlu2 %v339_v52, %s1548_s13  ;;  %v707_v51 = vstv %s1715_s30  ;;  %s1354_s30 = sld [smem:[#allocation12 + $0x28]] }
 0x108   :  { %303 = vrot.lane.b32.xlu1 %v301_v53, %s1543_s5 }
 0x109   :  { %v1669_v54 = vpop.permute.xlu2 %274 }
 0x10a   :  { %v276_v27 = vrot.slane %v1669_v54, 2 }
 0x10c   :  { %v278_v38 = vsel %vm277_vm11, %v1669_v54, %v276_v27 }
 0x10f   :  { %548 = vrot.lane.b32.xlu0 %v546_v59, %s1545_s7  ;;  %422 = vrot.lane.b32.xlu2 %v420_v60, %s1544_s6  ;;  %v780_v60 = vmul.f32 %v779_v46, %v1690_v9 }
 0x110   :  { %360 = vrot.lane.b32.xlu1 %v358_v61, %s1546_s11  ;;  %v708_v61 = vmul.f32 %v707_v51, %v1690_v9 }
 0x111   :  { %v1678_v62 = vpop.permute.xlu2 %312 }
 0x112   :  { %v314_v39 = vrot.slane %v1678_v62, 2 }
 0x114   :  { %v316_v52 = vsel %vm315_vm13, %v1678_v62, %v314_v39 }
 0x117   :  { %602 = vrot.lane.b32.xlu0 %v600_v3, %s1547_s12  ;;  %476 = vrot.lane.b32.xlu2 %v474_v4, %s1548_s13 }
 0x118   :  { %440 = vrot.lane.b32.xlu1 %v438_v5, %s1543_s5 }
 0x119   :  { %v396_v7 = vpop.permute.xlu2 %395 }
 0x11a   :  { %v397_v8 = vrot.slane %v396_v7, 2 }
 0x11c   :  { %v398_v15 = vsel %vm257_vm10, %v396_v7, %v397_v8  ;;  %v887_v7 = vstv %s1735_s8  ;;  %v761_v8 = vstv %s1738_s9  ;;  %s1905_s8 = sld [smem:[#allocation12 + $0x2f]] }
 0x11d   :  { %v1698_v16 = vadd.f32 %v398_v15, %v386_v12  ;;  %v725_v12 = vstv %s1743_s10  ;;  %s1376_s9 = sld [smem:[#allocation12 + $0x3e]] }
 0x11e   :  { %v726_v21 = vmul.f32 %v725_v12, %v1690_v9  ;;  %v1837_v12 = vld [vmem:[#allocation5] sm:$0x3f]  ;;  %s1916_s10 = sld [smem:[#allocation12 + $0x14]] }
 0x11f   :  { %692 = vrot.lane.b32.xlu0 %v690_v17, %s1545_s7  ;;  %566 = vrot.lane.b32.xlu2 %v564_v18, %s1544_s6  ;;  %v888_v17 = vmul.f32 %v887_v7, %v1764_v6  ;;  %v762_v18 = vmul.f32 %v761_v8, %v1690_v9  ;;  %v1004_v7 = vstv %s1811_s21  ;;  %v914_v8 = vstv %s1815_s22  ;;  %s1364_s21 = sld [smem:[#allocation12 + $0x32]]  ;;  %s1550_s22 = smov 126  }
 0x120   :  { %494 = vrot.lane.b32.xlu1 %v492_v19, %s1546_s11 }
 0x121   :  { %v1708_v48 = vpop.permute.xlu2 %449  ;;  %v294_v23 = vpop.permute.xlu0 %293 }
 0x122   :  { %v255_v24 = vpop.permute.xlu1 %254  ;;  %v295_v32 = vrot.slane %v294_v23, 2  ;;  %v451_v14 = vrot.slane %v1708_v48, 2 }
 0x123   :  { %v256_v28 = vrot.slane %v255_v24, 2 }
 0x124   :  { %v297_v42 = vsel %vm296_vm12, %v294_v23, %v295_v32  ;;  %v452_v25 = vsel %vm315_vm13, %v1708_v48, %v451_v14  ;;  %v851_v32 = vstv %s1768_s16  ;;  %v977_v14 = vstv %s1375_s23  ;;  %s1363_s16 = sld [smem:[#allocation12 + $0x31]]  ;;  %s1551_s23 = smov 125  }
 0x125   :  { %v258_v31 = vsel %vm257_vm10, %v255_v24, %v256_v28  ;;  %v673_v24 = vstv %s1758_s14  ;;  %s1922_s14 = sld [smem:[#allocation12 + $0x53]] }
 0x126   :  { %v260_v35 = vadd.f32 %v258_v31, %v244_v30  ;;  %v1788_v30 = vld [vmem:[#allocation4] sm:$0x3f]  ;;  %v968_v31 = vstv %s1762_s15  ;;  %s1383_s15 = sld [smem:[#allocation12 + $0x45]] }
 0x127   :  { %746 = vrot.lane.b32.xlu0 %v744_v33, %s1547_s12  ;;  %620 = vrot.lane.b32.xlu2 %v618_v34, %s1548_s13  ;;  %v674_v33 = vmul.f32 %v673_v24, %v1632_v13  ;;  %v969_v39 = vmul.f32 %v968_v31, %v1788_v30 }
 0x128   :  { %v280_v41 = vadd.f32 %v278_v38, %v260_v35  ;;  %584 = vrot.lane.b32.xlu1 %v582_v36, %s1543_s5  ;;  %v833_v36 = vstv %s1771_s17  ;;  %s1939_s17 = sld [smem:[#allocation12 + $0x30]] }
 0x129   :  { %v540_v44 = vpop.permute.xlu2 %539  ;;  %v351_v45 = vpop.permute.xlu0 %350 }
 0x12a   :  { %v299_v47 = vadd.f32 %v297_v42, %v280_v41  ;;  %v541_v49 = vrot.slane %v540_v44, 2  ;;  %v332_v50 = vpop.permute.xlu1 %331  ;;  %v352_v54 = vrot.slane %v351_v45, 2  ;;  %v852_v41 = vmul.f32 %v851_v32, %v1764_v6 }
 0x12b   :  { %v333_v53 = vrot.slane %v332_v50, 2 }
 0x12c   :  { %v542_v63 = vsel %vm257_vm10, %v540_v44, %v541_v49  ;;  %v318_v57 = vadd.f32 %v316_v52, %v299_v47  ;;  %v354_v1 = vsel %vm353_vm15, %v351_v45, %v352_v54  ;;  %v923_v49 = vstv %s1786_s18  ;;  %s1942_s18 = sld [smem:[#allocation12 + $0x22]] }
 0x12d   :  { %v1746_v58 = vadd.f32 %v542_v63, %v530_v43  ;;  %v335_v59 = vsel %vm334_vm14, %v332_v50, %v333_v53  ;;  %v834_v43 = vmul.f32 %v833_v36, %v1764_v6  ;;  %v905_v50 = vstv %s1792_s19  ;;  %s1390_s19 = sld [smem:[#allocation12 + $0x4c]] }
 0x12e   :  { %v337_v62 = vadd.f32 %v335_v59, %v318_v57  ;;  %v869_v53 = vstv %s1388_s20  ;;  %v924_v63 = vmul.f32 %v923_v49, %v1764_v6  ;;  %v906_v57 = vmul.f32 %v905_v50, %v1764_v6  ;;  %s1959_s20 = sld [smem:[#allocation12 + $0x5a]] }
 0x12f   :  { %782 = vrot.lane.b32.xlu0 %v780_v60, %s1546_s11  ;;  %710 = vrot.lane.b32.xlu2 %v708_v61, %s1544_s6  ;;  %v870_v60 = vmul.f32 %v869_v53, %v1764_v6  ;;  %v1112_v49 = vstv %s1853_s1  ;;  %v1022_v50 = vstv %s1857_s2  ;;  %s1369_s1 = sld [smem:[#allocation12 + $0x37]]  ;;  %s1553_s2 = smov 123  }
 0x130   :  { %v1755_v2 = vadd.f32 %v354_v1, %v337_v62  ;;  %638 = vrot.lane.b32.xlu1 %v636_v0, %s1546_s11 }
 0x131   :  { %v1760_v3 = vpop.permute.xlu2 %593  ;;  %v432_v4 = vpop.permute.xlu0 %431 }
 0x132   :  { %v414_v5 = vpop.permute.xlu1 %413  ;;  %v433_v11 = vrot.slane %v432_v4, 2  ;;  %v595_v54 = vrot.slane %v1760_v3, 2 }
 0x133   :  { %v415_v10 = vrot.slane %v414_v5, 2 }
 0x134   :  { %v434_v22 = vsel %vm296_vm12, %v432_v4, %v433_v11  ;;  %v596_v0 = vsel %vm315_vm13, %v1760_v3, %v595_v54 }
 0x135   :  { %v416_v15 = vsel %vm277_vm11, %v414_v5, %v415_v10 }
 0x136   :  { %v418_v19 = vadd.f32 %v416_v15, %v1698_v16  ;;  %v1005_v15 = vmul.f32 %v1004_v7, %v1788_v30  ;;  %v1049_v7 = vstv %s1882_s29 }
 0x137   :  { %890 = vrot.lane.b32.xlu0 %v888_v17, %s1547_s12  ;;  %764 = vrot.lane.b32.xlu2 %v762_v18, %s1548_s13  ;;  %v915_v17 = vmul.f32 %v914_v8, %v1640_v20 }
 0x138   :  { %v436_v23 = vadd.f32 %v434_v22, %v418_v19  ;;  %728 = vrot.lane.b32.xlu1 %v726_v21, %s1543_s5  ;;  %v978_v19 = vmul.f32 %v977_v14, %v1837_v12 }
 0x139   :  { %v684_v26 = vpop.permute.xlu2 %683  ;;  %v486_v16 = vpop.permute.xlu0 %485 }
 0x13a   :  { %v685_v27 = vrot.slane %v684_v26, 2  ;;  %v468_v28 = vpop.permute.xlu1 %467  ;;  %v454_v29 = vadd.f32 %v452_v25, %v436_v23  ;;  %v487_v35 = vrot.slane %v486_v16, 2 }
 0x13b   :  { %v469_v34 = vrot.slane %v468_v28, 2 }
 0x13c   :  { %v686_v48 = vsel %vm257_vm10, %v684_v26, %v685_v27  ;;  %v488_v13 = vsel %vm353_vm15, %v486_v16, %v487_v35  ;;  %v1031_v26 = vstv %s1831_s24  ;;  %v995_v16 = vstv %s1835_s25  ;;  %s1368_s24 = sld [smem:[#allocation12 + $0x36]] }
 0x13d   :  { %v1797_v37 = vadd.f32 %v686_v48, %v674_v33  ;;  %v470_v38 = vsel %vm334_vm14, %v468_v28, %v469_v34  ;;  %v1032_v33 = vmul.f32 %v1031_v26, %v1837_v12  ;;  %v996_v34 = vmul.f32 %v995_v16, %v1837_v12  ;;  %s1319_s25 = sld [smem:[#allocation12 + $0x5]] }
 0x13e   :  { %v472_v42 = vadd.f32 %v470_v38, %v454_v29  ;;  %v986_v29 = vstv %s1333_s26  ;;  %s1552_s26 = smov 124  }
 0x13f   :  { %971 = vrot.lane.b32.xlu0 %v969_v39, %s1545_s7  ;;  %854 = vrot.lane.b32.xlu2 %v852_v41, %s1544_s6  ;;  %v987_v36 = vmul.f32 %v986_v29, %v1788_v30  ;;  %v817_v39 = vstv %s1849_s0  ;;  %v1058_v29 = vstv %s1905_s8  ;;  %s1320_s0 = sld [smem:[#allocation12 + $0x6]]  ;;  %s1303_s8 = sshll.u32 %s2109_s3, 4  ;;  %s1304_s8 = int_to_ptr.hbm [resolvable:$true] %s1303_s8 }
 0x140   :  { %v1806_v44 = vadd.f32 %v488_v13, %v472_v42  ;;  %836 = vrot.lane.b32.xlu1 %v834_v43, %s1545_s7  ;;  %v818_v53 = vmul.f32 %v817_v39, %v1640_v20 }
 0x141   :  { %v1809_v45 = vpop.permute.xlu2 %737  ;;  %v576_v46 = vpop.permute.xlu0 %575 }
 0x142   :  { %v558_v47 = vpop.permute.xlu1 %557  ;;  %v577_v52 = vrot.slane %v576_v46, 2  ;;  %v739_v31 = vrot.slane %v1809_v45, 2 }
 0x143   :  { %v559_v51 = vrot.slane %v558_v47, 2 }
 0x144   :  { %v578_v61 = vsel %vm296_vm12, %v576_v46, %v577_v52  ;;  %v740_v41 = vsel %vm315_vm13, %v1809_v45, %v739_v31  ;;  %v1013_v45 = vstv %s1859_s27  ;;  %s1554_s27 = smov 122  }
 0x145   :  { %v560_v56 = vsel %vm277_vm11, %v558_v47, %v559_v51  ;;  %v1878_v47 = vld [vmem:[#allocation4] sm:$0x3f] }
 0x146   :  { %v562_v59 = vadd.f32 %v560_v56, %v1746_v58 }
 0x147   :  { %926 = vrot.lane.b32.xlu0 %v924_v63, %s1546_s11  ;;  %908 = vrot.lane.b32.xlu2 %v906_v57, %s1548_s13  ;;  %v1113_v57 = vmul.f32 %v1112_v49, %v1878_v47 }
 0x148   :  { %v580_v62 = vadd.f32 %v578_v61, %v562_v59  ;;  %872 = vrot.lane.b32.xlu1 %v870_v60, %s1543_s5  ;;  %v1023_v59 = vmul.f32 %v1022_v50, %v1788_v30  ;;  %v1014_v61 = vmul.f32 %v1013_v45, %v1837_v12  ;;  %v1130_v50 = vstv %s1916_s10 }
 0x149   :  { %v1829_v1 = vpop.permute.xlu2 %773  ;;  %v630_v4 = vpop.permute.xlu0 %629 }
 0x14a   :  { %v612_v58 = vpop.permute.xlu1 %611  ;;  %v598_v5 = vadd.f32 %v596_v0, %v580_v62  ;;  %v631_v11 = vrot.slane %v630_v4, 2  ;;  %v775_v51 = vrot.slane %v1829_v1, 2 }
 0x14b   :  { %v613_v10 = vrot.slane %v612_v58, 2 }
 0x14c   :  { %v632_v21 = vsel %vm353_vm15, %v630_v4, %v631_v11  ;;  %v776_v62 = vsel %vm353_vm15, %v1829_v1, %v775_v51 }
 0x14d   :  { %v614_v3 = vsel %vm334_vm14, %v612_v58, %v613_v10  ;;  %v1040_v10 = vstv %s1354_s30 }
 0x14e   :  { %v616_v18 = vadd.f32 %v614_v3, %v598_v5  ;;  %v1067_v5 = vstv %s1876_s28  ;;  %s1555_s28 = smov [#allocation13]  }
 0x14f   :  { %1007 = vrot.lane.b32.xlu0 %v1005_v15, %s1543_s5  ;;  %917 = vrot.lane.b32.xlu2 %v915_v17, %s1546_s11  ;;  %v1068_v3 = vmul.f32 %v1067_v5, %v1837_v12  ;;  %v1050_v15 = vmul.f32 %v1049_v7, %v1837_v12  ;;  %v1157_v7 = vstv %s1390_s19  ;;  %s1301_s29 = sshll.u32 %s1555_s28, 4  ;;  %s1302_s29 = int_to_ptr.vmem [resolvable:$true] %s1301_s29 }
 0x150   :  { %v1846_v22 = vadd.f32 %v632_v21, %v616_v18  ;;  %980 = vrot.lane.b32.xlu1 %v978_v19, %s1545_s7  ;;  %v1041_v18 = vmul.f32 %v1040_v10, %v1788_v30 }
 0x151   :  { %v1851_v23 = vpop.permute.xlu2 %881  ;;  %v720_v24 = vpop.permute.xlu0 %719 }
 0x152   :  { %v702_v25 = vpop.permute.xlu1 %701  ;;  %v721_v28 = vrot.slane %v720_v24, 2  ;;  %v883_v11 = vrot.slane %v1851_v23, 2 }
 0x153   :  { %v703_v27 = vrot.slane %v702_v25, 2 }
 0x154   :  { %v722_v48 = vsel %vm296_vm12, %v720_v24, %v721_v28  ;;  %v884_v24 = vsel %vm315_vm13, %v1851_v23, %v883_v11  ;;  %v1148_v28 = vstv %s1901_s4 }
 0x155   :  { %v704_v32 = vsel %vm277_vm11, %v702_v25, %v703_v27  ;;  %v1149_v23 = vmul.f32 %v1148_v28, %v1878_v47  ;;  %v389_v28 = vstv %s1364_s21 }
 0x156   :  { %v706_v35 = vadd.f32 %v704_v32, %v1797_v37  ;;  %v1926_v32 = vld [vmem:[#allocation5] sm:$0x3f] }
 0x157   :  { %1034 = vrot.lane.b32.xlu0 %v1032_v33, %s1547_s12  ;;  %998 = vrot.lane.b32.xlu2 %v996_v34, %s1544_s6  ;;  %v1121_v33 = vstv %s1376_s9 }
 0x158   :  { %v724_v38 = vadd.f32 %v722_v48, %v706_v35  ;;  %989 = vrot.lane.b32.xlu1 %v987_v36, %s1544_s6  ;;  %v1059_v35 = vmul.f32 %v1058_v29, %v1788_v30  ;;  %v1122_v48 = vmul.f32 %v1121_v33, %v1926_v32 }
 0x159   :  { %v1874_v42 = vpop.permute.xlu2 %284  ;;  %v828_v37 = vpop.permute.xlu0 %827 }
 0x15a   :  { %v756_v43 = vpop.permute.xlu1 %755  ;;  %v742_v13 = vadd.f32 %v740_v41, %v724_v38  ;;  %v829_v46 = vrot.slane %v828_v37, 2 }
 0x15b   :  { %v757_v52 = vrot.slane %v756_v43, 2 }
 0x15c   :  { %v830_v54 = vsel %vm257_vm10, %v828_v37, %v829_v46  ;;  %v1175_v37 = vstv %s1922_s14  ;;  %v246_v46 = vld [vmem:[#allocation5] sm:$0xf] }
 0x15d   :  { %v758_v56 = vsel %vm334_vm14, %v756_v43, %v757_v52  ;;  %v832_v63 = vadd.f32 %v830_v54, %v818_v53  ;;  %v1139_v43 = vstv %s1383_s15  ;;  %v1176_v52 = vmul.f32 %v1175_v37, %v1926_v32 }
 0x15e   :  { %v760_v60 = vadd.f32 %v758_v56, %v742_v13  ;;  %v247_v13 = vstv %s1363_s16  ;;  %v1140_v53 = vmul.f32 %v1139_v43, %v1926_v32  ;;  %v1131_v54 = vmul.f32 %v1130_v50, %v1878_v47 }
 0x15f   :  { %1115 = vrot.lane.b32.xlu0 %v1113_v57, %s1545_s7  ;;  %1025 = vrot.lane.b32.xlu2 %v1023_v59, %s1547_s12  ;;  %v248_v45 = vmul.f32 %v247_v13, %v246_v46  ;;  %v286_v56 = vrot.slane %v1874_v42, 2 }
 0x160   :  { %v1896_v20 = vadd.f32 %v776_v62, %v760_v60  ;;  %1016 = vrot.lane.b32.xlu1 %v1014_v61, %s1543_s5  ;;  %v1202_v61 = vstv %s1939_s17  ;;  %v1166_v62 = vstv %s1942_s18 }
 0x161   :  { %v1899_v0 = vpop.permute.xlu2 %341  ;;  %v864_v4 = vpop.permute.xlu0 %863  ;;  %v1203_v10 = vmul.f32 %v1202_v61, %v1878_v47  ;;  %v1167_v11 = vmul.f32 %v1166_v62, %v1878_v47 }
 0x162   :  { %v846_v58 = vpop.permute.xlu1 %845  ;;  %v865_v1 = vrot.slane %v864_v4, 2 }
 0x163   :  { %v847_v8 = vrot.slane %v846_v58, 2 }
 0x164   :  { %v866_v19 = vsel %vm296_vm12, %v864_v4, %v865_v1  ;;  %v287_v4 = vsel %vm277_vm11, %v1874_v42, %v286_v56 }
 0x165   :  { %v848_v14 = vsel %vm277_vm11, %v846_v58, %v847_v8 }
 0x166   :  { %v850_v17 = vadd.f32 %v848_v14, %v832_v63 }
 0x167   :  { %1070 = vrot.lane.b32.xlu0 %v1068_v3, %s1546_s11  ;;  %1052 = vrot.lane.b32.xlu2 %v1050_v15, %s1548_s13  ;;  %v1158_v3 = vmul.f32 %v1157_v7, %v1926_v32  ;;  %v343_v15 = vrot.slane %v1899_v0, 2 }
 0x168   :  { %v868_v21 = vadd.f32 %v866_v19, %v850_v17  ;;  %1043 = vrot.lane.b32.xlu1 %v1041_v18, %s1548_s13 }
 0x169   :  { %v1920_v25 = vpop.permute.xlu2 %422  ;;  %v323_v26 = vpop.permute.xlu0 %322 }
 0x16a   :  { %v900_v16 = vpop.permute.xlu1 %899  ;;  %v886_v27 = vadd.f32 %v884_v24, %v868_v21  ;;  %v324_v58 = vrot.slane %v323_v26, 2  ;;  %v424_v37 = vrot.slane %v1920_v25, 2 }
 0x16b   :  { %v901_v31 = vrot.slane %v900_v16, 2 }
 0x16c   :  { %v325_v42 = vsel %vm315_vm13, %v323_v26, %v324_v58 }
 0x16d   :  { %v902_v34 = vsel %vm334_vm14, %v900_v16, %v901_v31  ;;  %v1193_v16 = vstv %s1959_s20 }
 0x16e   :  { %v1931_v36 = vadd.f32 %v902_v34, %v886_v27  ;;  %v344_v27 = vsel %vm334_vm14, %v1899_v0, %v343_v15 }
 0x16f   :  { %1151 = vrot.lane.b32.xlu0 %v1149_v23, %s1543_s5  ;;  %1061 = vrot.lane.b32.xlu2 %v1059_v35, %s1546_s11  ;;  %v1194_v23 = vmul.f32 %v1193_v16, %v1926_v32  ;;  %v390_v35 = vmul.f32 %v389_v28, %v1659_v40  ;;  %v425_v40 = vsel %vm277_vm11, %v1920_v25, %v424_v37 }
 0x170   :  { %1124 = vrot.lane.b32.xlu1 %v1122_v48, %s1545_s7  ;;  %s1955_s7 = sld [smem:[#allocation12 + $0x29]] }
 0x171   :  { %v1937_v38 = vpop.permute.xlu2 %476  ;;  %v405_v39 = vpop.permute.xlu0 %404 }
 0x172   :  { %v266_v41 = vpop.permute.xlu1 %265  ;;  %v406_v18 = vrot.slane %v405_v39, 2 }
 0x173   :  { %v267_v49 = vrot.slane %v266_v41, 2 }
 0x174   :  { %v407_v33 = vsel %vm257_vm10, %v405_v39, %v406_v18 }
 0x175   :  { %v268_v51 = vsel %vm257_vm10, %v266_v41, %v267_v49  ;;  %v409_v0 = vadd.f32 %v407_v33, %v390_v35 }
 0x176   :  { %v270_v63 = vadd.f32 %v268_v51, %v248_v45  ;;  %v1184_v31 = vstv %s1955_s7 }
 0x177   :  { %1178 = vrot.lane.b32.xlu0 %v1176_v52, %s1547_s12  ;;  %1142 = vrot.lane.b32.xlu2 %v1140_v53, %s1544_s6  ;;  %v1185_v41 = vmul.f32 %v1184_v31, %v1878_v47  ;;  %v427_v52 = vadd.f32 %v425_v40, %v409_v0 }
 0x178   :  { %1133 = vrot.lane.b32.xlu1 %v1131_v54, %s1544_s6  ;;  %v289_v8 = vadd.f32 %v287_v4, %v270_v63  ;;  %s1411_s6 = sld [smem:[#allocation12 + $0x61]]  ;;  %v478_v54 = vrot.slane %v1937_v38, 2 }
 0x179   :  { %v1953_v57 = vpop.permute.xlu2 %566  ;;  %v459_v59 = vpop.permute.xlu0 %458 }
 0x17a   :  { %v304_v60 = vpop.permute.xlu1 %303  ;;  %v460_v49 = vrot.slane %v459_v59, 2  ;;  %v479_v4 = vsel %vm334_vm14, %v1937_v38, %v478_v54 }
 0x17b   :  { %v305_v5 = vrot.slane %v304_v60, 2 }
 0x17c   :  { %v461_v56 = vsel %vm315_vm13, %v459_v59, %v460_v49 }
 0x17d   :  { %v306_v1 = vsel %vm296_vm12, %v304_v60, %v305_v5 }
 0x17e   :  { %v308_v14 = vadd.f32 %v306_v1, %v289_v8  ;;  %v1211_v51 = vstv %s1411_s6 }
 0x17f   :  { %1205 = vrot.lane.b32.xlu0 %v1203_v10, %s1546_s11  ;;  %1169 = vrot.lane.b32.xlu2 %v1167_v11, %s1547_s12  ;;  %v568_v11 = vrot.slane %v1953_v57, 2  ;;  %s1549_s12 = smov 127  }
 0x180   :  { %v327_v17 = vadd.f32 %v325_v42, %v308_v14  ;;  %1160 = vrot.lane.b32.xlu1 %v1158_v3, %s1543_s5  ;;  %s1365_s5 = sld [smem:[#allocation12 + $0x33]] }
 0x181   :  { %v1972_v19 = vpop.permute.xlu2 %620  ;;  %v549_v21 = vpop.permute.xlu0 %548  ;;  %v569_v18 = vsel %vm277_vm11, %v1953_v57, %v568_v11 }
 0x182   :  { %v361_v24 = vpop.permute.xlu1 %360  ;;  %v346_v26 = vadd.f32 %v344_v27, %v327_v17  ;;  %v550_v60 = vrot.slane %v549_v21, 2 }
 0x183   :  { %v362_v29 = vrot.slane %v361_v24, 2 }
 0x184   :  { %v551_v8 = vsel %vm257_vm10, %v549_v21, %v550_v60 }
 0x185   :  { %v363_v34 = vsel %vm353_vm15, %v361_v24, %v362_v29 }
 0x186   :  { %v365_v48 = vadd.f32 %v363_v34, %v346_v26  ;;  %v533_v58 = vstv %s1365_s5 }
 0x187   :  { %1196 = vrot.lane.b32.xlu2 %v1194_v23, %s1548_s13  ;;  %v534_v59 = vmul.f32 %v533_v58, %v1671_v55 }
 0x188   :  { %v366_v43 = vadd.f32 %v365_v48, %v1755_v2  ;;  %1187 = vrot.lane.b32.xlu1 %v1185_v41, %s1548_s13  ;;  %v1212_v2 = vmul.f32 %v1211_v51, %v1926_v32  ;;  %s1367_s13 = sld [smem:[#allocation12 + $0x35]] }
 0x189   :  { %v1987_v13 = vpop.permute.xlu2 %710  ;;  %v603_v39 = vpop.permute.xlu0 %602  ;;  %v553_v14 = vadd.f32 %v551_v8, %v534_v59 }
 0x18a   :  { %373 = vst [vmem:[#allocation1] ss:$4 sm:$0xff] %v366_v43  ;;  %v441_v46 = vpop.permute.xlu1 %440  ;;  %v604_v21 = vrot.slane %v603_v39, 2 }
 0x18b   :  { %v442_v50 = vrot.slane %v441_v46, 2  ;;  %v571_v16 = vadd.f32 %v569_v18, %v553_v14 }
 0x18c   :  { %v605_v29 = vsel %vm315_vm13, %v603_v39, %v604_v21 }
 0x18d   :  { %v443_v53 = vsel %vm296_vm12, %v441_v46, %v442_v50  ;;  %v712_v50 = vrot.slane %v1987_v13, 2 }
 0x18e   :  { %v445_v45 = vadd.f32 %v443_v53, %v427_v52  ;;  %v821_v11 = vstv %s1367_s13 }
 0x190   :  { %v463_v63 = vadd.f32 %v461_v56, %v445_v45  ;;  %1214 = vrot.lane.b32.xlu1 %v1212_v2, %s1546_s11  ;;  %s1366_s11 = sld [smem:[#allocation12 + $0x34]]  ;;  %v713_v45 = vsel %vm277_vm11, %v1987_v13, %v712_v50 }
 0x191   :  { %v693_v61 = vpop.permute.xlu0 %692  ;;  %v1996_v25 = vpop.permute.xlu2 %764  ;;  %v2005_v15 = vld.sshfl [vmem:[#allocation1] sm:$0xff pattern:$0x73625140]  ;;  %v2007_v42 = vld.sshfl [vmem:[#allocation1 + $0x8] sm:$0xff pattern:$0x73625140] }
 0x192   :  { %v495_v62 = vpop.permute.xlu1 %494  ;;  %v481_v7 = vadd.f32 %v479_v4, %v463_v63  ;;  %v694_v31 = vrot.slane %v693_v61, 2  ;;  %v766_v63 = vrot.slane %v1996_v25, 2 }
 0x193   :  { %v496_v5 = vrot.slane %v495_v62, 2 }
 0x194   :  { %v695_v43 = vsel %vm257_vm10, %v693_v61, %v694_v31  ;;  %v767_v58 = vsel %vm334_vm14, %v1996_v25, %v766_v63 }
 0x195   :  { %v497_v1 = vsel %vm353_vm15, %v495_v62, %v496_v5 }
 0x196   :  { %v499_v10 = vadd.f32 %v497_v1, %v481_v7  ;;  %v677_v41 = vstv %s1366_s11 }
 0x197   :  { %v678_v46 = vmul.f32 %v677_v41, %v1690_v9 }
 0x198   :  { %v500_v3 = vadd.f32 %v499_v10, %v1806_v44  ;;  %v622_v44 = vrot.slane %v1972_v19, 2 }
 0x199   :  { %v747_v38 = vpop.permute.xlu0 %746  ;;  %v2011_v55 = vpop.permute.xlu2 %854  ;;  %v697_v51 = vadd.f32 %v695_v43, %v678_v46 }
 0x19a   :  { %507 = vst [vmem:[#allocation1] ss:$4 sm:$0xff] %v500_v3  ;;  %v585_v17 = vpop.permute.xlu1 %584  ;;  %v623_v48 = vsel %vm334_vm14, %v1972_v19, %v622_v44  ;;  %v748_v2 = vrot.slane %v747_v38, 2  ;;  %v856_v18 = vrot.slane %v2011_v55, 2 }
 0x19b   :  { %v586_v24 = vrot.slane %v585_v17, 2  ;;  %v715_v56 = vadd.f32 %v713_v45, %v697_v51 }
 0x19c   :  { %v749_v61 = vsel %vm315_vm13, %v747_v38, %v748_v2  ;;  %v965_v2 = vstv %s1368_s24 }
 0x19d   :  { %v587_v27 = vsel %vm296_vm12, %v585_v17, %v586_v24  ;;  %v822_v17 = vmul.f32 %v821_v11, %v1764_v6 }
 0x19e   :  { %v589_v28 = vadd.f32 %v587_v27, %v571_v16 }
 0x1a0   :  { %v607_v26 = vadd.f32 %v605_v29, %v589_v28  ;;  %v857_v28 = vsel %vm277_vm11, %v2011_v55, %v856_v18 }
 0x1a1   :  { %v510_v33 = vld.sshfl [vmem:[#allocation1 + $0x10] sm:$0xff pattern:$0x73625140]  ;;  %v509_v34 = vld.sshfl [vmem:[#allocation1 + $0x8] sm:$0xff pattern:$0x73625140]  ;;  %v783_v23 = vpop.permute.xlu0 %782  ;;  %v909_v40 = vpop.permute.xlu2 %908 }
 0x1a2   :  { %v639_v35 = vpop.permute.xlu1 %638  ;;  %515 = vrot.lane.b32.xlu1 %v510_v33, %s1549_s12  ;;  %513 = vrot.lane.b32.xlu0 %v509_v34, %s1549_s12  ;;  %v508_v57 = vld.sshfl [vmem:[#allocation1] sm:$0xff pattern:$0x73625140]  ;;  %v625_v0 = vadd.f32 %v623_v48, %v607_v26  ;;  %v784_v62 = vrot.slane %v783_v23, 2  ;;  %v910_v26 = vrot.slane %v909_v40, 2 }
 0x1a3   :  { %v640_v37 = vrot.slane %v639_v35, 2  ;;  %511 = vrot.lane.b32.xlu2 %v508_v57, %s1549_s12 }
 0x1a4   :  { %v785_v10 = vsel %vm353_vm15, %v783_v23, %v784_v62  ;;  %v911_v41 = vsel %vm334_vm14, %v909_v40, %v910_v26 }
 0x1a5   :  { %v641_v39 = vsel %vm353_vm15, %v639_v35, %v640_v37 }
 0x1a6   :  { %v643_v49 = vadd.f32 %v641_v39, %v625_v0 }
 0x1a8   :  { %v644_v52 = vadd.f32 %v643_v49, %v1846_v22 }
 0x1a9   :  { %v891_v53 = vpop.permute.xlu0 %890  ;;  %v918_v4 = vpop.permute.xlu2 %917 }
 0x1aa   :  { %651 = vst [vmem:[#allocation1] ss:$4 sm:$0xff] %v644_v52  ;;  %v729_v19 = vpop.permute.xlu1 %728  ;;  %v892_v44 = vrot.slane %v891_v53, 2  ;;  %v919_v33 = vrot.slane %v918_v4, 2 }
 0x1ab   :  { %v730_v54 = vrot.slane %v729_v19, 2 }
 0x1ac   :  { %v893_v6 = vsel %vm315_vm13, %v891_v53, %v892_v44  ;;  %v920_v55 = vsel %vm353_vm15, %v918_v4, %v919_v33 }
 0x1ad   :  { %v731_v9 = vsel %vm296_vm12, %v729_v19, %v730_v54  ;;  %v922_v46 = vadd.f32 %v920_v55, %v1931_v36  ;;  %v961_v54 = vstv %s1319_s25  ;;  %v966_v36 = vmul.f32 %v965_v2, %v1837_v12 }
 0x1ae   :  { %v733_v60 = vadd.f32 %v731_v9, %v715_v56 }
 0x1b0   :  { %v751_v22 = vadd.f32 %v749_v61, %v733_v60 }
 0x1b1   :  { %v654_v5 = vld.sshfl [vmem:[#allocation1 + $0x10] sm:$0xff pattern:$0x73625140]  ;;  %v653_v7 = vld.sshfl [vmem:[#allocation1 + $0x8] sm:$0xff pattern:$0x73625140]  ;;  %v2030_v13 = vpop.permute.xlu0 %971  ;;  %v999_v16 = vpop.permute.xlu2 %998 }
 0x1b2   :  { %v769_v8 = vadd.f32 %v767_v58, %v751_v22  ;;  %v837_v1 = vpop.permute.xlu1 %836  ;;  %659 = vrot.lane.b32.xlu1 %v654_v5, %s1550_s22  ;;  %657 = vrot.lane.b32.xlu0 %v653_v7, %s1550_s22  ;;  %v652_v59 = vld.sshfl [vmem:[#allocation1] sm:$0xff pattern:$0x73625140]  ;;  %v973_v45 = vrot.slane %v2030_v13, 2  ;;  %v1000_v9 = vrot.slane %v999_v16, 2  ;;  %v962_v22 = vmul.f32 %v961_v54, %v1788_v30 }
 0x1b3   :  { %v838_v14 = vrot.slane %v837_v1, 2  ;;  %655 = vrot.lane.b32.xlu2 %v652_v59, %s1550_s22 }
 0x1b4   :  { %v787_v3 = vadd.f32 %v785_v10, %v769_v8  ;;  %v974_v61 = vsel %vm257_vm10, %v2030_v13, %v973_v45  ;;  %v1001_v12 = vsel %vm277_vm11, %v999_v16, %v1000_v9 }
 0x1b5   :  { %v839_v38 = vsel %vm257_vm10, %v837_v1, %v838_v14  ;;  %v976_v1 = vadd.f32 %v974_v61, %v962_v22 }
 0x1b6   :  { %v788_v25 = vadd.f32 %v787_v3, %v1896_v20  ;;  %v841_v21 = vadd.f32 %v839_v38, %v822_v17 }
 0x1b8   :  { %795 = vst [vmem:[#allocation1] ss:$4 sm:$0xff] %v788_v25  ;;  %v859_v31 = vadd.f32 %v857_v28, %v841_v21 }
 0x1b9   :  { %v927_v24 = vpop.permute.xlu0 %926  ;;  %v1026_v49 = vpop.permute.xlu2 %1025 }
 0x1ba   :  { %v873_v27 = vpop.permute.xlu1 %872  ;;  %v928_v23 = vrot.slane %v927_v24, 2  ;;  %v1027_v25 = vrot.slane %v1026_v49, 2 }
 0x1bb   :  { %v874_v29 = vrot.slane %v873_v27, 2 }
 0x1bc   :  { %v929_v39 = vsel %vm353_vm15, %v927_v24, %v928_v23 }
 0x1bd   :  { %v875_v34 = vsel %vm296_vm12, %v873_v27, %v874_v29 }
 0x1be   :  { %v877_v20 = vadd.f32 %v875_v34, %v859_v31  ;;  %v1028_v31 = vsel %vm315_vm13, %v1026_v49, %v1027_v25 }
 0x1bf   :  { %v798_v35 = vld.sshfl [vmem:[#allocation1 + $0x10] sm:$0xff pattern:$0x73625140]  ;;  %v797_v48 = vld.sshfl [vmem:[#allocation1 + $0x8] sm:$0xff pattern:$0x73625140] }
 0x1c0   :  { %v895_v57 = vadd.f32 %v893_v6, %v877_v20  ;;  %803 = vrot.lane.b32.xlu0 %v798_v35, %s1551_s23  ;;  %801 = vrot.lane.b32.xlu2 %v797_v48, %s1551_s23  ;;  %v2047_v52 = vld.sshfl [vmem:[#allocation1] sm:$0xff pattern:$0x73625140] }
 0x1c1   :  { %v1008_v37 = vpop.permute.xlu0 %1007  ;;  %v1053_v60 = vpop.permute.xlu2 %1052 }
 0x1c2   :  { %v913_v0 = vadd.f32 %v911_v41, %v895_v57  ;;  %v981_v43 = vpop.permute.xlu1 %980  ;;  %v1009_v10 = vrot.slane %v1008_v37, 2  ;;  %v1054_v24 = vrot.slane %v1053_v60, 2 }
 0x1c3   :  { %v982_v40 = vrot.slane %v981_v43, 2 }
 0x1c4   :  { %v931_v50 = vadd.f32 %v929_v39, %v913_v0  ;;  %v1010_v17 = vsel %vm296_vm12, %v1008_v37, %v1009_v10  ;;  %v1055_v20 = vsel %vm334_vm14, %v1053_v60, %v1054_v24 }
 0x1c5   :  { %v983_v56 = vsel %vm257_vm10, %v981_v43, %v982_v40 }
 0x1c6   :  { %v932_v51 = vadd.f32 %v931_v50, %v922_v46  ;;  %v985_v58 = vadd.f32 %v983_v56, %v966_v36 }
 0x1c8   :  { %939 = vst [vmem:[#allocation1] ss:$4 sm:$0xff] %v932_v51  ;;  %v1003_v14 = vadd.f32 %v1001_v12, %v985_v58 }
 0x1c9   :  { %v1035_v53 = vpop.permute.xlu0 %1034  ;;  %v1062_v18 = vpop.permute.xlu2 %1061 }
 0x1ca   :  { %v990_v19 = vpop.permute.xlu1 %989  ;;  %v1036_v3 = vrot.slane %v1035_v53, 2  ;;  %v1063_v26 = vrot.slane %v1062_v18, 2 }
 0x1cb   :  { %v991_v63 = vrot.slane %v990_v19, 2 }
 0x1cc   :  { %v1037_v27 = vsel %vm315_vm13, %v1035_v53, %v1036_v3  ;;  %v1064_v48 = vsel %vm353_vm15, %v1062_v18, %v1063_v26  ;;  %v1105_v53 = vstv %s1320_s0 }
 0x1cd   :  { %v992_v7 = vsel %vm277_vm11, %v990_v19, %v991_v63  ;;  %v1109_v19 = vstv %s1369_s1  ;;  %v1106_v60 = vmul.f32 %v1105_v53, %v1878_v47  ;;  %v959_v53 = vld [vmem:[#allocation10 + $0x5] ss:$8 sm:$0x3] }
 0x1ce   :  { %v994_v13 = vadd.f32 %v992_v7, %v976_v1  ;;  %v1110_v36 = vmul.f32 %v1109_v19, %v1926_v32  ;;  %v241_v19 = vld [vmem:[#allocation10] ss:$8 sm:$0x3] }
 0x1cf   :  { %v942_v62 = vld.sshfl [vmem:[#allocation1 + $0x10] sm:$0xff pattern:$0x73625140]  ;;  %v941_v4 = vld.sshfl [vmem:[#allocation1 + $0x8] sm:$0xff pattern:$0x73625140] }
 0x1d0   :  { %947 = vrot.lane.b32.xlu0 %v942_v62, %s1552_s26  ;;  %945 = vrot.lane.b32.xlu2 %v941_v4, %s1552_s26  ;;  %v940_v5 = vld.sshfl [vmem:[#allocation1] sm:$0xff pattern:$0x73625140]  ;;  %v1012_v21 = vadd.f32 %v1010_v17, %v994_v13 }
 0x1d1   :  { %943 = vrot.lane.b32.xlu1 %v940_v5, %s1552_s26  ;;  %v1116_v8 = vpop.permute.xlu0 %1115  ;;  %v1143_v43 = vpop.permute.xlu2 %1142 }
 0x1d2   :  { %v1017_v59 = vpop.permute.xlu1 %1016  ;;  %v1030_v34 = vadd.f32 %v1028_v31, %v1012_v21  ;;  %v1117_v51 = vrot.slane %v1116_v8, 2  ;;  %v1144_v62 = vrot.slane %v1143_v43, 2 }
 0x1d3   :  { %v1018_v11 = vrot.slane %v1017_v59, 2 }
 0x1d4   :  { %v1118_v56 = vsel %vm257_vm10, %v1116_v8, %v1117_v51 }
 0x1d5   :  { %v1019_v30 = vsel %vm296_vm12, %v1017_v59, %v1018_v11  ;;  %v1120_v58 = vadd.f32 %v1118_v56, %v1106_v60  ;;  %v1145_v59 = vsel %vm277_vm11, %v1143_v43, %v1144_v62  ;;  %v527_v56 = vld [vmem:[#allocation10 + $0x2] ss:$8 sm:$0x3]  ;;  %v1103_v60 = vld [vmem:[#allocation10 + $0x6] ss:$8 sm:$0x3] }
 0x1d6   :  { %v1021_v38 = vadd.f32 %v1019_v30, %v1003_v14 }
 0x1d8   :  { %v1039_v44 = vadd.f32 %v1037_v27, %v1021_v38 }
 0x1d9   :  { %v1071_v28 = vpop.permute.xlu0 %1070  ;;  %v1170_v2 = vpop.permute.xlu2 %1169 }
 0x1da   :  { %v1044_v29 = vpop.permute.xlu1 %1043  ;;  %v1072_v16 = vrot.slane %v1071_v28, 2  ;;  %v1057_v57 = vadd.f32 %v1055_v20, %v1039_v44  ;;  %v1171_v11 = vrot.slane %v1170_v2, 2 }
 0x1db   :  { %v1045_v33 = vrot.slane %v1044_v29, 2 }
 0x1dc   :  { %v1073_v23 = vsel %vm353_vm15, %v1071_v28, %v1072_v16  ;;  %v1172_v25 = vsel %vm315_vm13, %v1170_v2, %v1171_v11 }
 0x1dd   :  { %v1046_v6 = vsel %vm334_vm14, %v1044_v29, %v1045_v33  ;;  %v1075_v55 = vadd.f32 %v1073_v23, %v1057_v57 }
 0x1de   :  { %v1048_v35 = vadd.f32 %v1046_v6, %v1030_v34 }
 0x1e0   :  { %v1066_v41 = vadd.f32 %v1064_v48, %v1048_v35 }
 0x1e1   :  { %v1152_v39 = vpop.permute.xlu0 %1151  ;;  %v1197_v14 = vpop.permute.xlu2 %1196 }
 0x1e2   :  { %v1076_v37 = vadd.f32 %v1075_v55, %v1066_v41  ;;  %v1125_v0 = vpop.permute.xlu1 %1124  ;;  %v1153_v7 = vrot.slane %v1152_v39, 2  ;;  %v1198_v17 = vrot.slane %v1197_v14, 2 }
 0x1e3   :  { %v1126_v40 = vrot.slane %v1125_v0, 2 }
 0x1e4   :  { %1083 = vst [vmem:[#allocation1] ss:$4 sm:$0xff] %v1076_v37  ;;  %v1154_v47 = vsel %vm296_vm12, %v1152_v39, %v1153_v7  ;;  %v1199_v16 = vsel %vm334_vm14, %v1197_v14, %v1198_v17 }
 0x1e5   :  { %v1127_v63 = vsel %vm257_vm10, %v1125_v0, %v1126_v40 }
 0x1e6   :  { %v1129_v5 = vadd.f32 %v1127_v63, %v1110_v36  ;;  %v1079_v63 = vperm.slane %v959_v53, 1 }
 0x1e8   :  { %v1147_v12 = vadd.f32 %v1145_v59, %v1129_v5 }
 0x1e9   :  { %v1179_v61 = vpop.permute.xlu0 %1178 }
 0x1ea   :  { %v1134_v46 = vpop.permute.xlu1 %1133  ;;  %v1180_v32 = vrot.slane %v1179_v61, 2 }
 0x1eb   :  { %v1086_v49 = vld.sshfl [vmem:[#allocation1 + $0x10] sm:$0xff pattern:$0x73625140]  ;;  %v1085_v50 = vld.sshfl [vmem:[#allocation1 + $0x8] sm:$0xff pattern:$0x73625140] }
 0x1ec   :  { %1091 = vrot.lane.b32.xlu2 %v1086_v49, %s1553_s2  ;;  %1089 = vrot.lane.b32.xlu1 %v1085_v50, %s1553_s2  ;;  %v1135_v45 = vrot.slane %v1134_v46, 2  ;;  %v1084_v9 = vld.sshfl [vmem:[#allocation1] sm:$0xff pattern:$0x73625140]  ;;  %v1181_v18 = vsel %vm315_vm13, %v1179_v61, %v1180_v32 }
 0x1ee   :  { %v1136_v4 = vsel %vm277_vm11, %v1134_v46, %v1135_v45 }
 0x1ef   :  { %v1138_v1 = vadd.f32 %v1136_v4, %v1120_v58  ;;  %v647_v4 = vperm.slane %v527_v56, 1  ;;  %v369_v58 = vperm.slane %v241_v19, 1 }
 0x1f1   :  { %v1156_v3 = vadd.f32 %v1154_v47, %v1138_v1  ;;  %v1206_v38 = vpop.permute.xlu0 %1205  ;;  %v1223_v1 = vperm.slane %v1103_v60, 1 }
 0x1f2   :  { %v1161_v54 = vpop.permute.xlu1 %1160  ;;  %v1207_v28 = vrot.slane %v1206_v38, 2 }
 0x1f3   :  { %v1162_v22 = vrot.slane %v1161_v54, 2  ;;  %v1174_v27 = vadd.f32 %v1172_v25, %v1156_v3 }
 0x1f4   :  { %1087 = vrot.lane.b32.xlu2 %v1084_v9, %s1553_s2  ;;  %v1208_v33 = vsel %vm353_vm15, %v1206_v38, %v1207_v28  ;;  %v1078_v38 = vperm.slane %v959_v53, 0 }
 0x1f5   :  { %v1163_v8 = vsel %vm296_vm12, %v1161_v54, %v1162_v22  ;;  %v815_v54 = vld [vmem:[#allocation10 + $0x4] ss:$8 sm:$0x3]  ;;  %v671_v22 = vld [vmem:[#allocation10 + $0x3] ss:$8 sm:$0x3] }
 0x1f6   :  { %v1165_v30 = vadd.f32 %v1163_v8, %v1147_v12  ;;  %v935_v61 = vperm.slane %v815_v54, 1  ;;  %v791_v12 = vperm.slane %v671_v22, 1 }
 0x1f8   :  { %v1183_v24 = vadd.f32 %v1181_v18, %v1165_v30 }
 0x1fa   :  { %v1188_v10 = vpop.permute.xlu1 %1187  ;;  %v1201_v26 = vadd.f32 %v1199_v16, %v1183_v24  ;;  %v646_v16 = vperm.slane %v527_v56, 0 }
 0x1fb   :  { %v1189_v13 = vrot.slane %v1188_v10, 2 }
 0x1fd   :  { %v1190_v21 = vsel %vm334_vm14, %v1188_v10, %v1189_v13  ;;  %v512_v41 = vpop.permute.xlu2 %511  ;;  %v379_v13 = vmul.f32 %v2007_v42, %v369_v58 }
 0x1fe   :  { %v1192_v44 = vadd.f32 %v1190_v21, %v1174_v27  ;;  %v934_v27 = vperm.slane %v815_v54, 0 }
 0x200   :  { %v1210_v20 = vadd.f32 %v1208_v33, %v1192_v44 }
 0x202   :  { %v1215_v29 = vpop.permute.xlu1 %1214 }
 0x203   :  { %v1216_v31 = vrot.slane %v1215_v29, 2 }
 0x205   :  { %v1217_v34 = vsel %vm353_vm15, %v1215_v29, %v1216_v31  ;;  %v368_v31 = vperm.slane %v241_v19, 0 }
 0x206   :  { %v1219_v6 = vadd.f32 %v1217_v34, %v1201_v26 }
 0x208   :  { %v1220_v23 = vadd.f32 %v1219_v6, %v1210_v20  ;;  %v1222_v20 = vperm.slane %v1103_v60, 0 }
 0x20a   :  { %1227 = vst [vmem:[#allocation1] ss:$4 sm:$0xff] %v1220_v23 }
 0x20d   :  { %v2081_v37 = vpop.permute.xlu2 %655 }
 0x211   :  { %v1230_v35 = vld.sshfl [vmem:[#allocation1 + $0x10] sm:$0xff pattern:$0x73625140]  ;;  %v1229_v57 = vld.sshfl [vmem:[#allocation1 + $0x8] sm:$0xff pattern:$0x73625140] }
 0x212   :  { %1235 = vrot.lane.b32.xlu1 %v1230_v35, %s1554_s27  ;;  %1233 = vrot.lane.b32.xlu0 %v1229_v57, %s1554_s27  ;;  %v1228_v48 = vld.sshfl [vmem:[#allocation1] sm:$0xff pattern:$0x73625140] }
 0x214   :  { %v514_v55 = vpop.permute.xlu0 %513  ;;  %v516_v0 = vpop.permute.xlu1 %515 }
 0x215   :  { %v519_v62 = vsel %vm517_vm2, %v514_v55, %v516_v0  ;;  %v518_v29 = vsel %vm517_vm2, %v512_v41, %v514_v55 }
 0x21a   :  { %799 = vrot.lane.b32.xlu1 %v2047_v52, %s1551_s23  ;;  %1231 = vrot.lane.b32.xlu0 %v1228_v48, %s1554_s27  ;;  %v2083_v39 = vpop.permute.xlu2 %801  ;;  %v383_v52 = vld [vmem:[#allocation10 + $0x1] ss:$8 sm:$0x3]  ;;  %v790_v48 = vperm.slane %v671_v22, 0 }
 0x21b   :  { %v503_v36 = vperm.slane %v383_v52, 1  ;;  %v502_v18 = vperm.slane %v383_v52, 0 }
 0x21d   :  { %v523_v8 = vmul.f32 %v519_v62, %v503_v36  ;;  %v522_v23 = vmul.f32 %v518_v29, %v502_v18 }
 0x224   :  { %v658_v43 = vpop.permute.xlu0 %657  ;;  %v660_v46 = vpop.permute.xlu1 %659 }
 0x225   :  { %v663_v59 = vsel %vm661_vm4, %v658_v43, %v660_v46  ;;  %v662_v6 = vsel %vm661_vm4, %v2081_v37, %v658_v43 }
 0x226   :  { %v667_v3 = vmul.f32 %v663_v59, %v647_v4 }
 0x22a   :  { %v946_v50 = vpop.permute.xlu2 %945 }
 0x232   :  { %v804_v49 = vpop.permute.xlu0 %803 }
 0x233   :  { %v807_v32 = vsel %vm805_vm5, %v2083_v39, %v804_v49  ;;  %v378_v49 = vmul.f32 %v2005_v15, %v368_v31 }
 0x234   :  { %v811_v24 = vmul.f32 %v807_v32, %v791_v12 }
 0x242   :  { %v948_v40 = vpop.permute.xlu0 %947 }
 0x243   :  { %v944_v51 = vpop.permute.xlu1 %943  ;;  %v951_v5 = vsel %vm949_vm3, %v946_v50, %v948_v40 }
 0x244   :  { %v955_v10 = vmul.f32 %v951_v5, %v935_v61  ;;  %v950_v42 = vsel %vm949_vm3, %v944_v51, %v946_v50  ;;  %v666_v50 = vmul.f32 %v662_v6, %v646_v16 }
 0x245   :  { %v954_v35 = vmul.f32 %v950_v42, %v934_v27 }
 0x246   :  { %v1092_v45 = vpop.permute.xlu2 %1091  ;;  %v957_v28 = vadd.f32 %v955_v10, %v379_v13 }
 0x247   :  { %v956_v19 = vadd.f32 %v954_v35, %v378_v49 }
 0x24e   :  { %v1088_v30 = vpop.permute.xlu2 %1087 }
 0x25e   :  { %v1090_v2 = vpop.permute.xlu1 %1089 }
 0x25f   :  { %v1095_v9 = vsel %vm1093_vm1, %v1090_v2, %v1092_v45  ;;  %v1094_v21 = vsel %vm1093_vm1, %v1088_v30, %v1090_v2 }
 0x260   :  { %v1099_v7 = vmul.f32 %v1095_v9, %v1079_v63  ;;  %v1098_v26 = vmul.f32 %v1094_v21, %v1078_v38 }
 0x262   :  { %v1101_v25 = vadd.f32 %v1099_v7, %v523_v8  ;;  %v1100_v51 = vadd.f32 %v1098_v26, %v522_v23 }
 0x264   :  { %v1247_v33 = vadd.f32 %v1101_v25, %v957_v28  ;;  %v1246_v45 = vadd.f32 %v1100_v51, %v956_v19 }
 0x284   :  { %v1236_v11 = vpop.permute.xlu1 %1235  ;;  %v1234_v47 = vpop.permute.xlu0 %1233 }
 0x285   :  { %v1239_v14 = vsel %vm1237_vm6, %v1234_v47, %v1236_v11 }
 0x286   :  { %v1243_v17 = vmul.f32 %v1239_v14, %v1223_v1 }
 0x288   :  { %v1245_v44 = vadd.f32 %v1243_v17, %v667_v3 }
 0x28a   :  { %v1249_v34 = vadd.f32 %v1245_v44, %v811_v24 }
 0x28c   :  { %v1251_v57 = vadd.f32 %v1249_v34, %v1247_v33  ;;  %v800_v0 = vpop.permute.xlu1 %799  ;;  %v1232_v46 = vpop.permute.xlu0 %1231 }
 0x28d   :  { %v806_v41 = vsel %vm805_vm5, %v800_v0, %v2083_v39  ;;  %v1238_v55 = vsel %vm1237_vm6, %v1232_v46, %v1234_v47 }
 0x28e   :  { %v1413_v40 = vmul.f32 -1.442695, %v1251_v57  ;;  %v1242_v53 = vmul.f32 %v1238_v55, %v1222_v20  ;;  %v810_v37 = vmul.f32 %v806_v41, %v790_v48 }
 0x290   :  { %1435 = vpow2.f32 %v1413_v40  ;;  %v1244_v43 = vadd.f32 %v1242_v53, %v666_v50 }
 0x292   :  { %v1248_v2 = vadd.f32 %v1244_v43, %v810_v37 }
 0x294   :  { %v1250_v52 = vadd.f32 %v1248_v2, %v1246_v45 }
 0x296   :  { %v1436_v54 = vpop.eup %1435  ;;  %v1412_v56 = vmul.f32 -1.442695, %v1250_v52 }
 0x297   :  { %v1259_v63 = vadd.f32 1.0, %v1436_v54 }
 0x298   :  { %1437 = vpow2.f32 %v1412_v56 }
 0x299   :  { %1439 = vrcp.f32 %v1259_v63  ;;  %v1286_v22 = vand.u32 2147483648, %v1259_v63  ;;  %vm1280_vm8 = vweird.f32 %v1259_v63  ;;  %v1284_v5 = vand.u32 2147483647, %v1259_v63 }
 0x29b   :  { %v1287_v8 = vor.u32 1.1754944e-38, %v1286_v22  ;;  %vm1285_vm11 = vcmp.eq.f32.partialorder %v1284_v5, 8.507059e+37 }
 0x29e   :  { %v1438_v15 = vpop.eup %1437 }
 0x29f   :  { %v1440_v39 = vpop.eup %1439  ;;  %v1258_v9 = vadd.f32 1.0, %v1438_v15 }
 0x2a0   :  { %v1276_v60 = vmul.f32 %v1440_v39, %v1259_v63  ;;  %vm1281_vm7 = vweird.f32 %v1440_v39 }
 0x2a1   :  { %1441 = vrcp.f32 %v1258_v9  ;;  %vm1282_vm9 = vmor %vm1280_vm8, %vm1281_vm7  ;;  %v1271_v59 = vand.u32 2147483648, %v1258_v9  ;;  %v1269_v10 = vand.u32 2147483647, %v1258_v9  ;;  %vm1265_vm12 = vweird.f32 %v1258_v9 }
 0x2a2   :  { %v1277_v36 = vsub.f32 1.0, %v1276_v60 }
 0x2a3   :  { %v1272_v32 = vor.u32 1.1754944e-38, %v1271_v59  ;;  %vm1270_vm14 = vcmp.eq.f32.partialorder %v1269_v10, 8.507059e+37 }
 0x2a4   :  { %v1278_v61 = vmul.f32 %v1440_v39, %v1277_v36 }
 0x2a6   :  { %v1279_v62 = vadd.f32 %v1440_v39, %v1278_v61 }
 0x2a7   :  { %v1442_v4 = vpop.eup %1441 }
 0x2a8   :  { %v1261_v58 = vmul.f32 %v1442_v4, %v1258_v9  ;;  %v1283_v1 = vsel %vm1282_vm9, %v1440_v39, %v1279_v62  ;;  %vm1266_vm10 = vweird.f32 %v1442_v4 }
 0x2a9   :  { %v1288_v11 = vsel %vm1285_vm11, %v1287_v8, %v1283_v1  ;;  %vm1267_vm13 = vmor %vm1265_vm12, %vm1266_vm10 }
 0x2aa   :  { %v1262_v7 = vsub.f32 1.0, %v1261_v58  ;;  %v1292_v14 = vrot.slane %v1288_v11, 6 }
 0x2ac   :  { %v1263_v12 = vmul.f32 %v1442_v4, %v1262_v7 }
 0x2ae   :  { %v1264_v47 = vadd.f32 %v1442_v4, %v1263_v12 }
 0x2b0   :  { %v1268_v13 = vsel %vm1267_vm13, %v1442_v4, %v1264_v47 }
 0x2b1   :  { %v1273_v3 = vsel %vm1270_vm14, %v1272_v32, %v1268_v13 }
 0x2b2   :  { %v1293_v30 = vsel %vm212_vm0, %v1273_v3, %v1292_v14 }
 0x2b3   :  { %1295 = vst [vmem:[#allocation13] sm:$0xf] %v1293_v30 }
 0x2b4   :  { %1306 = dma.vmem_to_hbm [thread:$0]  %s1302_s29, 64, %s1304_s8, [#allocation8]  }
 0x2b5   :  { %1533 = dma.done.wait [#allocation8], 64  }
 0x2b6   :  { %1534 = vsyncadd [#allocation8], 4294967232 }
 0x2b7   :  { %1311 = vsyncpa [#allocation7], 1 }
 0x2b8   :  { %1312 = vsyncpa [#allocation11], 1 }
 0x2b9   :  { %1313 = vsyncpa [#allocation8], 1 }
 0x2ba   :  { %1314 = vsyncpa [#allocation9], 1 }

</bundles_post_ra>
